<compile_context>
chip_gen: v7x
topology: tpu7x:2x2x1
jax: 0.10.0
libtpu: 0.0.40
codegen_flags: <defaults>
</compile_context>

<pallas_src>
import functools
import math

import jax
import jax.numpy as jnp
from jax.experimental import pallas as pl
from jax.experimental.pallas import tpu as pltpu

_EPS = 1e-5


# -----------------------------------------------------------------------------
# Pallas kernel: whole InvertibleNN.forward for one batch tile (batch on lanes).
#   x_ref    : (Dp, TB)         input tile, features on sublanes (pad rows = 0)
#   w1_ref   : (L, 2H, Dp)      fused, transposed layer-1 weights [sW1^T ; tW1^T]
#   w2_ref   : (L, 2H, 2H)      transposed block-diag(sW2, tW2)
#   w3_ref   : (L, 2Dp, 2H)     transposed layer-3: s_pre -> rows [0:D],
#                               t -> rows [Dp:Dp+D], rest zero
#   b12_ref  : (L, 2, 2H, 1)    fused biases for layers 1 and 2
#   b3_ref   : (L, 2Dp, 1)      layer-3 bias (same row packing as w3)
#   msc_ref  : (L, 2, Dp, 1)    [0]=mask (pad rows 1), [1]=scale (pad rows 0)
#   fcw_ref  : (Cw, Dp)         rows [0:T]=fcW^T, rows [T:T+D]=I_D, rest zero
#   fcbo_ref : (2, Cw, 1)       [0]=fc bias column, [1]=one-hot row for logdet
#   out_ref  : (Cw, TB)         [fc_out ; x ; logdet ; zero pad]
# -----------------------------------------------------------------------------
def _invnn_kernel(x_ref, w1_ref, w2_ref, w3_ref, b12_ref, b3_ref, msc_ref,
                  fcw_ref, fcbo_ref, out_ref, *, d_log4):
    x = x_ref[...]                                  # (Dp, TB) float32
    Dp = x.shape[0]
    L = w1_ref.shape[0]

    # "un-squash" pre-transform x -> atanh(x/4) with shared log terms.
    #   log|1/4 * 1/(1-u^2)| = -log4 - log(1+u) - log(1-u)
    u = 0.25 * x
    lp = jnp.log(1.0 + u)
    lm = jnp.log(1.0 - u)
    x = 0.5 * (lp - lm)
    ld = -(lp + lm)                                 # (Dp, TB) per-feature logdet partial

    # Affine couplings applied in reverse order (InvertibleNN.forward).
    for i in range(L - 1, -1, -1):
        m = msc_ref[i, 0]                           # (Dp, 1)
        scale = msc_ref[i, 1]                       # (Dp, 1)
        one_m = 1.0 - m

        xm = x * m
        # fused [s | t] subnetworks, batch on lanes: h = W^T @ act
        h = jnp.maximum(
            jnp.dot(w1_ref[i], xm, preferred_element_type=jnp.float32)
            + b12_ref[i, 0], 0.0)                   # (2H, TB)
        h = jnp.maximum(
            jnp.dot(w2_ref[i], h, preferred_element_type=jnp.float32)
            + b12_ref[i, 1], 0.0)                   # (2H, TB)
        h3 = (jnp.dot(w3_ref[i], h, preferred_element_type=jnp.float32)
              + b3_ref[i])                          # (2Dp, TB): [s_pre ; t]

        s = jnp.maximum(h3[:Dp], 0.0) * scale       # relu(bn(fc3)) * scale
        t = h3[Dp:]                                 # translation-net output

        # coupling forward transform + per-feature logdet accumulation
        x = m * x + one_m * ((x - t) * jnp.exp(-s))
        ld = ld - one_m * s

    # single sublane reduction for the total log-determinant
    logdet = jnp.sum(ld, axis=0, keepdims=True) - d_log4    # (1, TB)

    # classifier + x passthrough + logdet injection, one lane-dense store
    out_ref[...] = (jnp.dot(fcw_ref[...], x, preferred_element_type=jnp.float32)
                    + fcbo_ref[0] + fcbo_ref[1] * logdet)


# -----------------------------------------------------------------------------
# Wrapper: grid over the batch (lane) dimension, parameters resident everywhere.
# -----------------------------------------------------------------------------
def _num_tensorcores():
    """Best-effort query of TensorCores per chip (megacore-aware tiling)."""
    try:
        info = pltpu.get_tpu_info()
        for attr in ("num_cores", "tensor_cores_per_chip", "core_count",
                     "num_tensorcores"):
            v = getattr(info, attr, None)
            if v:
                return max(1, int(v))
    except Exception:
        pass
    try:
        return max(1, int(getattr(jax.devices()[0], "num_cores", 1)))
    except Exception:
        return 1


def invertible_nn_forward(x, params, *, max_tile_b=2048, num_cores=None):
    B, D = x.shape
    w1, w2, w3 = params['w1t'], params['w2t'], params['w3t']
    b12, b3 = params['b12'], params['b3']
    msc = params['msc']
    fcw, fcbo = params['fcw'], params['fcbo']
    T = params['num_tasks']
    Dp = w1.shape[2]
    Cw = fcw.shape[0]

    if num_cores is None:
        num_cores = _num_tensorcores()

    # Batch tile: whole batch (grid=1) on single-TC chips, even per-core split
    # on multi-core parts; always a multiple of 128 lanes, capped at max_tile_b.
    per_core = pl.cdiv(B, max(1, num_cores))
    tb = min(((per_core + 127) // 128) * 128, max_tile_b)
    grid_b = pl.cdiv(B, tb)
    Bp = grid_b * tb

    # Transpose to batch-on-lanes and zero-pad; pad rows/cols are numerically
    # inert (mask pad rows = 1, scale/weight pad rows = 0, padded x = 0).
    xt = jnp.zeros((Dp, Bp), jnp.float32).at[:D, :B].set(x.T)

    def _full(a):
        return pl.BlockSpec(a.shape, lambda i, nd=a.ndim: (0,) * nd)

    kernel = functools.partial(_invnn_kernel, d_log4=float(D) * math.log(4.0))

    combined = pl.pallas_call(
        kernel,
        grid=(grid_b,),
        in_specs=[pl.BlockSpec((Dp, tb), lambda i: (0, i)),
                  _full(w1), _full(w2), _full(w3), _full(b12), _full(b3),
                  _full(msc), _full(fcw), _full(fcbo)],
        out_specs=pl.BlockSpec((Cw, tb), lambda i: (0, i)),
        out_shape=jax.ShapeDtypeStruct((Cw, Bp), jnp.float32),
        compiler_params=pltpu.CompilerParams(
            dimension_semantics=("parallel",)),
    )(xt, w1, w2, w3, b12, b3, msc, fcw, fcbo)

    out = combined[:T, :B].T
    x_out = combined[T:T + D, :B].T
    logdet = combined[T + D, :B]
    return out, x_out, logdet


# -----------------------------------------------------------------------------
# Deterministic parameter construction (mirrors the PyTorch module shapes).
# -----------------------------------------------------------------------------
def init_model(key, inp_dim, hidden_dim, num_tasks, masks):
    keys = iter(jax.random.split(key, 256))

    def linear(in_d, out_d):
        W = jax.random.normal(next(keys), (in_d, out_d), jnp.float32) / jnp.sqrt(float(in_d))
        b = 0.1 * jax.random.normal(next(keys), (out_d,), jnp.float32)
        return W, b

    def bn(d):
        gamma = 1.0 + 0.1 * jax.random.normal(next(keys), (d,), jnp.float32)
        beta = 0.1 * jax.random.normal(next(keys), (d,), jnp.float32)
        mean = 0.1 * jax.random.normal(next(keys), (d,), jnp.float32)
        var = 1.0 + 0.1 * jax.random.uniform(next(keys), (d,), jnp.float32)
        return gamma, beta, mean, var

    raw = []
    for _ in masks:
        c = {}
        dims = [(inp_dim, hidden_dim), (hidden_dim, hidden_dim), (hidden_dim, inp_dim)]
        for net in ('s', 't'):
            for j, (di, do) in enumerate(dims, start=1):
                W, b = linear(di, do)
                c[f'{net}W{j}'] = W
                c[f'{net}b{j}'] = b
                c[f'{net}bn{j}'] = bn(do)
        c['scale'] = jax.random.normal(next(keys), (inp_dim,), jnp.float32)
        raw.append(c)

    fc = linear(inp_dim, num_tasks)
    return raw, fc


def fold_params(raw, fc, masks, hidden_dim):
    """Fold eval-mode BN into Linears, fuse s/t nets, transpose & pack (feat-major)."""
    def fold(W, b, bnp):
        gamma, beta, mean, var = bnp
        a = gamma / jnp.sqrt(var + _EPS)
        return W * a[None, :], (b - mean) * a + beta

    D = int(masks[0].shape[0])
    H = hidden_dim
    P = 2 * H
    Dp = ((D + 7) // 8) * 8                           # sublane-aligned feature dim

    w1_l, w2_l, w3_l, b12_l, b3_l, msc_l = [], [], [], [], [], []
    for c, mask in zip(raw, masks):
        f = {}
        for net in ('s', 't'):
            for j in (1, 2, 3):
                W, b = fold(c[f'{net}W{j}'], c[f'{net}b{j}'], c[f'{net}bn{j}'])
                f[f'{net}W{j}'] = W
                f[f'{net}b{j}'] = b

        # layer 1 (transposed): rows [0:H]=sW1^T, rows [H:2H]=tW1^T, cols [D:Dp]=0
        w1 = jnp.zeros((P, Dp), jnp.float32)
        w1 = w1.at[:H, :D].set(f['sW1'].T).at[H:, :D].set(f['tW1'].T)
        b1 = jnp.concatenate([f['sb1'], f['tb1']])
        # layer 2 (transposed block-diagonal)
        w2 = jnp.zeros((P, P), jnp.float32)
        w2 = w2.at[:H, :H].set(f['sW2'].T).at[H:, H:].set(f['tW2'].T)
        b2 = jnp.concatenate([f['sb2'], f['tb2']])
        # layer 3 (transposed): s_pre -> rows [0:D], t -> rows [Dp:Dp+D] (aligned)
        w3 = jnp.zeros((2 * Dp, P), jnp.float32)
        w3 = w3.at[:D, :H].set(f['sW3'].T).at[Dp:Dp + D, H:].set(f['tW3'].T)
        b3 = jnp.zeros((2 * Dp,), jnp.float32)
        b3 = b3.at[:D].set(f['sb3']).at[Dp:Dp + D].set(f['tb3'])

        # mask pad rows = 1 (padded features stay 0), scale pad rows = 0
        mpad = jnp.ones((Dp,), jnp.float32).at[:D].set(mask.astype(jnp.float32))
        spad = jnp.zeros((Dp,), jnp.float32).at[:D].set(c['scale'])

        w1_l.append(w1)
        w2_l.append(w2)
        w3_l.append(w3)
        b12_l.append(jnp.stack([b1, b2])[:, :, None])          # (2, 2H, 1)
        b3_l.append(b3[:, None])                                # (2Dp, 1)
        msc_l.append(jnp.stack([mpad, spad])[:, :, None])       # (2, Dp, 1)

    w1t = jnp.stack(w1_l)                                       # (L, 2H, Dp)
    w2t = jnp.stack(w2_l)                                       # (L, 2H, 2H)
    w3t = jnp.stack(w3_l)                                       # (L, 2Dp, 2H)
    b12 = jnp.stack(b12_l)                                      # (L, 2, 2H, 1)
    b3p = jnp.stack(b3_l)                                       # (L, 2Dp, 1)
    msc = jnp.stack(msc_l)                                      # (L, 2, Dp, 1)

    fcW, fcb = fc                                               # (D, T), (T,)
    T = int(fcW.shape[1])
    Cw = ((T + D + 1 + 7) // 8) * 8                             # sublane-aligned height
    fcw = jnp.zeros((Cw, Dp), jnp.float32)
    fcw = fcw.at[:T, :D].set(fcW.T)                             # fc weights
    fcw = fcw.at[T:T + D, :D].set(jnp.eye(D, dtype=jnp.float32))  # x passthrough
    fcbo = jnp.zeros((2, Cw, 1), jnp.float32)
    fcbo = fcbo.at[0, :T, 0].set(fcb)                           # fc bias column
    fcbo = fcbo.at[1, T + D, 0].set(1.0)                        # logdet one-hot row
    return dict(w1t=w1t, w2t=w2t, w3t=w3t, b12=b12, b3=b3p, msc=msc,
                fcw=fcw, fcbo=fcbo, num_tasks=T)


# -----------------------------------------------------------------------------
# Pure-JAX reference (explicit eval-mode BN, unfolded, unfused) for verification.
# -----------------------------------------------------------------------------
def reference_forward(x, raw, fc, masks):
    def bn_eval(y, p):
        gamma, beta, mean, var = p
        return (y - mean) / jnp.sqrt(var + _EPS) * gamma + beta

    logdet = jnp.sum(jnp.log(jnp.abs(0.25 / (1.0 - (x / 4.0) ** 2))), axis=-1)
    x = 0.5 * jnp.log((1.0 + x / 4.0) / (1.0 - x / 4.0))
    for i in range(len(raw) - 1, -1, -1):
        c, m = raw[i], masks[i]
        xm = x * m
        s = jax.nn.relu(bn_eval(xm @ c['sW1'] + c['sb1'], c['sbn1']))
        s = jax.nn.relu(bn_eval(s @ c['sW2'] + c['sb2'], c['sbn2']))
        s = jax.nn.relu(bn_eval(s @ c['sW3'] + c['sb3'], c['sbn3'])) * c['scale']
        t = jax.nn.relu(bn_eval(xm @ c['tW1'] + c['tb1'], c['tbn1']))
        t = jax.nn.relu(bn_eval(t @ c['tW2'] + c['tb2'], c['tbn2']))
        t = bn_eval(t @ c['tW3'] + c['tb3'], c['tbn3'])
        x = m * x + (1.0 - m) * ((x - t) * jnp.exp(-s))
        logdet = logdet + jnp.sum((1.0 - m) * (-s), axis=-1)
    out = x @ fc[0] + fc[1]
    return out, x, logdet


if __name__ == "__main__":
    inp_dim, hidden_dim, num_tasks = 4, 32, 3
    B = 512
    masks = [jnp.array([1.0, 0.0, 1.0, 0.0], jnp.float32),
             jnp.array([0.0, 1.0, 0.0, 1.0], jnp.float32)]

    key = jax.random.PRNGKey(0)
    kp, kx = jax.random.split(key)
    raw, fc = init_model(kp, inp_dim, hidden_dim, num_tasks, masks)
    params = fold_params(raw, fc, masks, hidden_dim)

    # inputs must lie in (-4, 4) for the atanh(x/4) pre-transform
    x = jax.random.uniform(kx, (B, inp_dim), jnp.float32, minval=-3.0, maxval=3.0)

    out, x_out, logdet = invertible_nn_forward(x, params)
    jax.block_until_ready((out, x_out, logdet))

    ref_out, ref_x, ref_logdet = reference_forward(x, raw, fc, masks)
    assert jnp.allclose(out, ref_out, atol=1e-4, rtol=1e-4)
    assert jnp.allclose(x_out, ref_x, atol=1e-4, rtol=1e-4)
    assert jnp.allclose(logdet, ref_logdet, atol=1e-4, rtol=1e-4)

    print("KERNEL_OK")
</pallas_src>

<mosaic_0001>
module attributes {stable_mosaic.version = 11 : i64} {
  func.func @_invnn_kernel(%arg0: i32, %arg1: memref<8x512xf32, #tpu.memory_space<vmem>>, %arg2: memref<2x64x8xf32, #tpu.memory_space<vmem>>, %arg3: memref<2x64x64xf32, #tpu.memory_space<vmem>>, %arg4: memref<2x16x64xf32, #tpu.memory_space<vmem>>, %arg5: memref<2x2x64x1xf32, #tpu.memory_space<vmem>>, %arg6: memref<2x16x1xf32, #tpu.memory_space<vmem>>, %arg7: memref<2x2x8x1xf32, #tpu.memory_space<vmem>>, %arg8: memref<8x8xf32, #tpu.memory_space<vmem>>, %arg9: memref<2x8x1xf32, #tpu.memory_space<vmem>>, %arg10: memref<8x512xf32, #tpu.memory_space<vmem>>) attributes {dimension_semantics = [#tpu.dimension_semantics<parallel>], iteration_bounds = array<i64: 1>, scalar_prefetch = 0 : i64, scratch_operands = 0 : i64, tpu.core_type = #tpu.core_type<tc>, window_params = [{transform_indices = @transform_0, window_bounds = array<i64: 8, 512>}, {pipeline_mode = #tpu.pipeline_mode<synchronous>, transform_indices = @transform_1, window_bounds = array<i64: 2, 64, 8>}, {pipeline_mode = #tpu.pipeline_mode<synchronous>, transform_indices = @transform_2, window_bounds = array<i64: 2, 64, 64>}, {pipeline_mode = #tpu.pipeline_mode<synchronous>, transform_indices = @transform_3, window_bounds = array<i64: 2, 16, 64>}, {pipeline_mode = #tpu.pipeline_mode<synchronous>, transform_indices = @transform_4, window_bounds = array<i64: 2, 2, 64, 1>}, {pipeline_mode = #tpu.pipeline_mode<synchronous>, transform_indices = @transform_5, window_bounds = array<i64: 2, 16, 1>}, {pipeline_mode = #tpu.pipeline_mode<synchronous>, transform_indices = @transform_6, window_bounds = array<i64: 2, 2, 8, 1>}, {pipeline_mode = #tpu.pipeline_mode<synchronous>, transform_indices = @transform_7, window_bounds = array<i64: 8, 8>}, {pipeline_mode = #tpu.pipeline_mode<synchronous>, transform_indices = @transform_8, window_bounds = array<i64: 2, 8, 1>}, {transform_indices = @transform_9, window_bounds = array<i64: 8, 512>}]} {
    %c0 = arith.constant 0 : index
    %c0_0 = arith.constant 0 : index
    %0 = vector.load %arg1[%c0, %c0_0] : memref<8x512xf32, #tpu.memory_space<vmem>>, vector<8x512xf32>
    %cst = arith.constant 2.500000e-01 : f32
    %1 = vector.broadcast %cst : f32 to vector<8x512xf32>
    %2 = arith.mulf %1, %0 : vector<8x512xf32>
    %cst_1 = arith.constant 1.000000e+00 : f32
    %3 = vector.broadcast %cst_1 : f32 to vector<8x512xf32>
    %4 = arith.addf %3, %2 : vector<8x512xf32>
    %5 = math.log %4 : vector<8x512xf32>
    %cst_2 = arith.constant 1.000000e+00 : f32
    %6 = vector.broadcast %cst_2 : f32 to vector<8x512xf32>
    %7 = arith.subf %6, %2 : vector<8x512xf32>
    %8 = math.log %7 : vector<8x512xf32>
    %9 = arith.subf %5, %8 : vector<8x512xf32>
    %cst_3 = arith.constant 5.000000e-01 : f32
    %10 = vector.broadcast %cst_3 : f32 to vector<8x512xf32>
    %11 = arith.mulf %10, %9 : vector<8x512xf32>
    %12 = arith.addf %5, %8 : vector<8x512xf32>
    %cst_4 = arith.constant 0.000000e+00 : f32
    %13 = vector.broadcast %cst_4 : f32 to vector<8x512xf32>
    %14 = arith.subf %13, %12 : vector<8x512xf32>
    %c1 = arith.constant 1 : index
    %c0_5 = arith.constant 0 : index
    %c0_6 = arith.constant 0 : index
    %c0_7 = arith.constant 0 : index
    %15 = vector.load %arg7[%c1, %c0_5, %c0_6, %c0_7] : memref<2x2x8x1xf32, #tpu.memory_space<vmem>>, vector<1x1x8x1xf32>
    %16 = vector.shape_cast %15 : vector<1x1x8x1xf32> to vector<8x1xf32>
    %c1_8 = arith.constant 1 : index
    %c1_9 = arith.constant 1 : index
    %c0_10 = arith.constant 0 : index
    %c0_11 = arith.constant 0 : index
    %17 = vector.load %arg7[%c1_8, %c1_9, %c0_10, %c0_11] : memref<2x2x8x1xf32, #tpu.memory_space<vmem>>, vector<1x1x8x1xf32>
    %18 = vector.shape_cast %17 : vector<1x1x8x1xf32> to vector<8x1xf32>
    %cst_12 = arith.constant 1.000000e+00 : f32
    %19 = vector.broadcast %cst_12 : f32 to vector<8x1xf32>
    %20 = arith.subf %19, %16 : vector<8x1xf32>
    %21 = vector.broadcast %16 : vector<8x1xf32> to vector<8x512xf32>
    %22 = arith.mulf %11, %21 : vector<8x512xf32>
    %c1_13 = arith.constant 1 : index
    %c0_14 = arith.constant 0 : index
    %c0_15 = arith.constant 0 : index
    %23 = vector.load %arg2[%c1_13, %c0_14, %c0_15] : memref<2x64x8xf32, #tpu.memory_space<vmem>>, vector<1x64x8xf32>
    %24 = vector.shape_cast %23 : vector<1x64x8xf32> to vector<64x8xf32>
    %cst_16 = arith.constant dense<0.000000e+00> : vector<64x512xf32>
    %25 = tpu.matmul %24, %22, %cst_16 {dimension_numbers = #tpu.dot_dimension_numbers<[1], [0], [0], [1], [0, 0, 1, 1], [], []>} : vector<64x8xf32>, vector<8x512xf32>, vector<64x512xf32> -> vector<64x512xf32>
    %c1_17 = arith.constant 1 : index
    %c0_18 = arith.constant 0 : index
    %c0_19 = arith.constant 0 : index
    %c0_20 = arith.constant 0 : index
    %26 = vector.load %arg5[%c1_17, %c0_18, %c0_19, %c0_20] : memref<2x2x64x1xf32, #tpu.memory_space<vmem>>, vector<1x1x64x1xf32>
    %27 = vector.shape_cast %26 : vector<1x1x64x1xf32> to vector<64x1xf32>
    %28 = vector.broadcast %27 : vector<64x1xf32> to vector<64x512xf32>
    %29 = arith.addf %25, %28 : vector<64x512xf32>
    %cst_21 = arith.constant 0.000000e+00 : f32
    %30 = vector.broadcast %cst_21 : f32 to vector<64x512xf32>
    %31 = arith.maximumf %29, %30 : vector<64x512xf32>
    %c1_22 = arith.constant 1 : index
    %c0_23 = arith.constant 0 : index
    %c0_24 = arith.constant 0 : index
    %32 = vector.load %arg3[%c1_22, %c0_23, %c0_24] : memref<2x64x64xf32, #tpu.memory_space<vmem>>, vector<1x64x64xf32>
    %33 = vector.shape_cast %32 : vector<1x64x64xf32> to vector<64x64xf32>
    %cst_25 = arith.constant dense<0.000000e+00> : vector<64x512xf32>
    %34 = tpu.matmul %33, %31, %cst_25 {dimension_numbers = #tpu.dot_dimension_numbers<[1], [0], [0], [1], [0, 0, 1, 1], [], []>} : vector<64x64xf32>, vector<64x512xf32>, vector<64x512xf32> -> vector<64x512xf32>
    %c1_26 = arith.constant 1 : index
    %c1_27 = arith.constant 1 : index
    %c0_28 = arith.constant 0 : index
    %c0_29 = arith.constant 0 : index
    %35 = vector.load %arg5[%c1_26, %c1_27, %c0_28, %c0_29] : memref<2x2x64x1xf32, #tpu.memory_space<vmem>>, vector<1x1x64x1xf32>
    %36 = vector.shape_cast %35 : vector<1x1x64x1xf32> to vector<64x1xf32>
    %37 = vector.broadcast %36 : vector<64x1xf32> to vector<64x512xf32>
    %38 = arith.addf %34, %37 : vector<64x512xf32>
    %cst_30 = arith.constant 0.000000e+00 : f32
    %39 = vector.broadcast %cst_30 : f32 to vector<64x512xf32>
    %40 = arith.maximumf %38, %39 : vector<64x512xf32>
    %c1_31 = arith.constant 1 : index
    %c0_32 = arith.constant 0 : index
    %c0_33 = arith.constant 0 : index
    %41 = vector.load %arg4[%c1_31, %c0_32, %c0_33] : memref<2x16x64xf32, #tpu.memory_space<vmem>>, vector<1x16x64xf32>
    %42 = vector.shape_cast %41 : vector<1x16x64xf32> to vector<16x64xf32>
    %cst_34 = arith.constant dense<0.000000e+00> : vector<16x512xf32>
    %43 = tpu.matmul %42, %40, %cst_34 {dimension_numbers = #tpu.dot_dimension_numbers<[1], [0], [0], [1], [0, 0, 1, 1], [], []>} : vector<16x64xf32>, vector<64x512xf32>, vector<16x512xf32> -> vector<16x512xf32>
    %c1_35 = arith.constant 1 : index
    %c0_36 = arith.constant 0 : index
    %c0_37 = arith.constant 0 : index
    %44 = vector.load %arg6[%c1_35, %c0_36, %c0_37] : memref<2x16x1xf32, #tpu.memory_space<vmem>>, vector<1x16x1xf32>
    %45 = vector.shape_cast %44 : vector<1x16x1xf32> to vector<16x1xf32>
    %46 = vector.broadcast %45 : vector<16x1xf32> to vector<16x512xf32>
    %47 = arith.addf %43, %46 : vector<16x512xf32>
    %48 = vector.extract_strided_slice %47 {offsets = [0, 0], sizes = [8, 512], strides = [1, 1]} : vector<16x512xf32> to vector<8x512xf32>
    %cst_38 = arith.constant 0.000000e+00 : f32
    %49 = vector.broadcast %cst_38 : f32 to vector<8x512xf32>
    %50 = arith.maximumf %48, %49 : vector<8x512xf32>
    %51 = vector.broadcast %18 : vector<8x1xf32> to vector<8x512xf32>
    %52 = arith.mulf %50, %51 : vector<8x512xf32>
    %53 = vector.extract_strided_slice %47 {offsets = [8, 0], sizes = [8, 512], strides = [1, 1]} : vector<16x512xf32> to vector<8x512xf32>
    %54 = vector.broadcast %16 : vector<8x1xf32> to vector<8x512xf32>
    %55 = arith.mulf %54, %11 : vector<8x512xf32>
    %56 = arith.subf %11, %53 : vector<8x512xf32>
    %cst_39 = arith.constant 0.000000e+00 : f32
    %57 = vector.broadcast %cst_39 : f32 to vector<8x512xf32>
    %58 = arith.subf %57, %52 : vector<8x512xf32>
    %59 = math.exp %58 : vector<8x512xf32>
    %60 = arith.mulf %56, %59 : vector<8x512xf32>
    %61 = vector.broadcast %20 : vector<8x1xf32> to vector<8x512xf32>
    %62 = arith.mulf %61, %60 : vector<8x512xf32>
    %63 = arith.addf %55, %62 : vector<8x512xf32>
    %64 = vector.broadcast %20 : vector<8x1xf32> to vector<8x512xf32>
    %65 = arith.mulf %64, %52 : vector<8x512xf32>
    %66 = arith.subf %14, %65 : vector<8x512xf32>
    %c0_40 = arith.constant 0 : index
    %c0_41 = arith.constant 0 : index
    %c0_42 = arith.constant 0 : index
    %c0_43 = arith.constant 0 : index
    %67 = vector.load %arg7[%c0_40, %c0_41, %c0_42, %c0_43] : memref<2x2x8x1xf32, #tpu.memory_space<vmem>>, vector<1x1x8x1xf32>
    %68 = vector.shape_cast %67 : vector<1x1x8x1xf32> to vector<8x1xf32>
    %c0_44 = arith.constant 0 : index
    %c1_45 = arith.constant 1 : index
    %c0_46 = arith.constant 0 : index
    %c0_47 = arith.constant 0 : index
    %69 = vector.load %arg7[%c0_44, %c1_45, %c0_46, %c0_47] : memref<2x2x8x1xf32, #tpu.memory_space<vmem>>, vector<1x1x8x1xf32>
    %70 = vector.shape_cast %69 : vector<1x1x8x1xf32> to vector<8x1xf32>
    %cst_48 = arith.constant 1.000000e+00 : f32
    %71 = vector.broadcast %cst_48 : f32 to vector<8x1xf32>
    %72 = arith.subf %71, %68 : vector<8x1xf32>
    %73 = vector.broadcast %68 : vector<8x1xf32> to vector<8x512xf32>
    %74 = arith.mulf %63, %73 : vector<8x512xf32>
    %c0_49 = arith.constant 0 : index
    %c0_50 = arith.constant 0 : index
    %c0_51 = arith.constant 0 : index
    %75 = vector.load %arg2[%c0_49, %c0_50, %c0_51] : memref<2x64x8xf32, #tpu.memory_space<vmem>>, vector<1x64x8xf32>
    %76 = vector.shape_cast %75 : vector<1x64x8xf32> to vector<64x8xf32>
    %cst_52 = arith.constant dense<0.000000e+00> : vector<64x512xf32>
    %77 = tpu.matmul %76, %74, %cst_52 {dimension_numbers = #tpu.dot_dimension_numbers<[1], [0], [0], [1], [0, 0, 1, 1], [], []>} : vector<64x8xf32>, vector<8x512xf32>, vector<64x512xf32> -> vector<64x512xf32>
    %c0_53 = arith.constant 0 : index
    %c0_54 = arith.constant 0 : index
    %c0_55 = arith.constant 0 : index
    %c0_56 = arith.constant 0 : index
    %78 = vector.load %arg5[%c0_53, %c0_54, %c0_55, %c0_56] : memref<2x2x64x1xf32, #tpu.memory_space<vmem>>, vector<1x1x64x1xf32>
    %79 = vector.shape_cast %78 : vector<1x1x64x1xf32> to vector<64x1xf32>
    %80 = vector.broadcast %79 : vector<64x1xf32> to vector<64x512xf32>
    %81 = arith.addf %77, %80 : vector<64x512xf32>
    %cst_57 = arith.constant 0.000000e+00 : f32
    %82 = vector.broadcast %cst_57 : f32 to vector<64x512xf32>
    %83 = arith.maximumf %81, %82 : vector<64x512xf32>
    %c0_58 = arith.constant 0 : index
    %c0_59 = arith.constant 0 : index
    %c0_60 = arith.constant 0 : index
    %84 = vector.load %arg3[%c0_58, %c0_59, %c0_60] : memref<2x64x64xf32, #tpu.memory_space<vmem>>, vector<1x64x64xf32>
    %85 = vector.shape_cast %84 : vector<1x64x64xf32> to vector<64x64xf32>
    %cst_61 = arith.constant dense<0.000000e+00> : vector<64x512xf32>
    %86 = tpu.matmul %85, %83, %cst_61 {dimension_numbers = #tpu.dot_dimension_numbers<[1], [0], [0], [1], [0, 0, 1, 1], [], []>} : vector<64x64xf32>, vector<64x512xf32>, vector<64x512xf32> -> vector<64x512xf32>
    %c0_62 = arith.constant 0 : index
    %c1_63 = arith.constant 1 : index
    %c0_64 = arith.constant 0 : index
    %c0_65 = arith.constant 0 : index
    %87 = vector.load %arg5[%c0_62, %c1_63, %c0_64, %c0_65] : memref<2x2x64x1xf32, #tpu.memory_space<vmem>>, vector<1x1x64x1xf32>
    %88 = vector.shape_cast %87 : vector<1x1x64x1xf32> to vector<64x1xf32>
    %89 = vector.broadcast %88 : vector<64x1xf32> to vector<64x512xf32>
    %90 = arith.addf %86, %89 : vector<64x512xf32>
    %cst_66 = arith.constant 0.000000e+00 : f32
    %91 = vector.broadcast %cst_66 : f32 to vector<64x512xf32>
    %92 = arith.maximumf %90, %91 : vector<64x512xf32>
    %c0_67 = arith.constant 0 : index
    %c0_68 = arith.constant 0 : index
    %c0_69 = arith.constant 0 : index
    %93 = vector.load %arg4[%c0_67, %c0_68, %c0_69] : memref<2x16x64xf32, #tpu.memory_space<vmem>>, vector<1x16x64xf32>
    %94 = vector.shape_cast %93 : vector<1x16x64xf32> to vector<16x64xf32>
    %cst_70 = arith.constant dense<0.000000e+00> : vector<16x512xf32>
    %95 = tpu.matmul %94, %92, %cst_70 {dimension_numbers = #tpu.dot_dimension_numbers<[1], [0], [0], [1], [0, 0, 1, 1], [], []>} : vector<16x64xf32>, vector<64x512xf32>, vector<16x512xf32> -> vector<16x512xf32>
    %c0_71 = arith.constant 0 : index
    %c0_72 = arith.constant 0 : index
    %c0_73 = arith.constant 0 : index
    %96 = vector.load %arg6[%c0_71, %c0_72, %c0_73] : memref<2x16x1xf32, #tpu.memory_space<vmem>>, vector<1x16x1xf32>
    %97 = vector.shape_cast %96 : vector<1x16x1xf32> to vector<16x1xf32>
    %98 = vector.broadcast %97 : vector<16x1xf32> to vector<16x512xf32>
    %99 = arith.addf %95, %98 : vector<16x512xf32>
    %100 = vector.extract_strided_slice %99 {offsets = [0, 0], sizes = [8, 512], strides = [1, 1]} : vector<16x512xf32> to vector<8x512xf32>
    %cst_74 = arith.constant 0.000000e+00 : f32
    %101 = vector.broadcast %cst_74 : f32 to vector<8x512xf32>
    %102 = arith.maximumf %100, %101 : vector<8x512xf32>
    %103 = vector.broadcast %70 : vector<8x1xf32> to vector<8x512xf32>
    %104 = arith.mulf %102, %103 : vector<8x512xf32>
    %105 = vector.extract_strided_slice %99 {offsets = [8, 0], sizes = [8, 512], strides = [1, 1]} : vector<16x512xf32> to vector<8x512xf32>
    %106 = vector.broadcast %68 : vector<8x1xf32> to vector<8x512xf32>
    %107 = arith.mulf %106, %63 : vector<8x512xf32>
    %108 = arith.subf %63, %105 : vector<8x512xf32>
    %cst_75 = arith.constant 0.000000e+00 : f32
    %109 = vector.broadcast %cst_75 : f32 to vector<8x512xf32>
    %110 = arith.subf %109, %104 : vector<8x512xf32>
    %111 = math.exp %110 : vector<8x512xf32>
    %112 = arith.mulf %108, %111 : vector<8x512xf32>
    %113 = vector.broadcast %72 : vector<8x1xf32> to vector<8x512xf32>
    %114 = arith.mulf %113, %112 : vector<8x512xf32>
    %115 = arith.addf %107, %114 : vector<8x512xf32>
    %116 = vector.broadcast %72 : vector<8x1xf32> to vector<8x512xf32>
    %117 = arith.mulf %116, %104 : vector<8x512xf32>
    %118 = arith.subf %66, %117 : vector<8x512xf32>
    %cst_76 = arith.constant dense<0.000000e+00> : vector<512xf32>
    %119 = vector.multi_reduction <add>, %118, %cst_76 [0] : vector<8x512xf32> to vector<512xf32>
    %120 = vector.shape_cast %119 : vector<512xf32> to vector<1x512xf32>
    %cst_77 = arith.constant 5.54517746 : f32
    %121 = vector.broadcast %cst_77 : f32 to vector<1x512xf32>
    %122 = arith.subf %120, %121 : vector<1x512xf32>
    %c0_78 = arith.constant 0 : index
    %c0_79 = arith.constant 0 : index
    %123 = vector.load %arg8[%c0_78, %c0_79] : memref<8x8xf32, #tpu.memory_space<vmem>>, vector<8x8xf32>
    %cst_80 = arith.constant dense<0.000000e+00> : vector<8x512xf32>
    %124 = tpu.matmul %123, %115, %cst_80 {dimension_numbers = #tpu.dot_dimension_numbers<[1], [0], [0], [1], [0, 0, 1, 1], [], []>} : vector<8x8xf32>, vector<8x512xf32>, vector<8x512xf32> -> vector<8x512xf32>
    %c0_81 = arith.constant 0 : index
    %c0_82 = arith.constant 0 : index
    %c0_83 = arith.constant 0 : index
    %125 = vector.load %arg9[%c0_81, %c0_82, %c0_83] : memref<2x8x1xf32, #tpu.memory_space<vmem>>, vector<1x8x1xf32>
    %126 = vector.shape_cast %125 : vector<1x8x1xf32> to vector<8x1xf32>
    %127 = vector.broadcast %126 : vector<8x1xf32> to vector<8x512xf32>
    %128 = arith.addf %124, %127 : vector<8x512xf32>
    %c1_84 = arith.constant 1 : index
    %c0_85 = arith.constant 0 : index
    %c0_86 = arith.constant 0 : index
    %129 = vector.load %arg9[%c1_84, %c0_85, %c0_86] : memref<2x8x1xf32, #tpu.memory_space<vmem>>, vector<1x8x1xf32>
    %130 = vector.shape_cast %129 : vector<1x8x1xf32> to vector<8x1xf32>
    %131 = vector.broadcast %130 : vector<8x1xf32> to vector<8x512xf32>
    %132 = vector.broadcast %122 : vector<1x512xf32> to vector<8x512xf32>
    %133 = arith.mulf %131, %132 : vector<8x512xf32>
    %134 = arith.addf %128, %133 : vector<8x512xf32>
    %c0_87 = arith.constant 0 : index
    %c0_88 = arith.constant 0 : index
    %135 = vector.load %arg10[%c0_87, %c0_88] : memref<8x512xf32, #tpu.memory_space<vmem>>, vector<8x512xf32>
    tpu.vector_store %arg10[%c0_87, %c0_88], %134 {strides = array<i32>} : memref<8x512xf32, #tpu.memory_space<vmem>>, vector<8x512xf32>,
    return
  }
  func.func @transform_0(%arg0: i32) -> (i32, i32) {
    %c0_i32 = arith.constant 0 : i32
    %c0_i32_0 = arith.constant 0 : i32
    return %c0_i32, %arg0 : i32, i32
  }
  func.func @transform_1(%arg0: i32) -> (i32, i32, i32) {
    %c0_i32 = arith.constant 0 : i32
    %c0_i32_0 = arith.constant 0 : i32
    %c0_i32_1 = arith.constant 0 : i32
    %c0_i32_2 = arith.constant 0 : i32
    return %c0_i32, %c0_i32_0, %c0_i32_1 : i32, i32, i32
  }
  func.func @transform_2(%arg0: i32) -> (i32, i32, i32) {
    %c0_i32 = arith.constant 0 : i32
    %c0_i32_0 = arith.constant 0 : i32
    %c0_i32_1 = arith.constant 0 : i32
    %c0_i32_2 = arith.constant 0 : i32
    return %c0_i32, %c0_i32_0, %c0_i32_1 : i32, i32, i32
  }
  func.func @transform_3(%arg0: i32) -> (i32, i32, i32) {
    %c0_i32 = arith.constant 0 : i32
    %c0_i32_0 = arith.constant 0 : i32
    %c0_i32_1 = arith.constant 0 : i32
    %c0_i32_2 = arith.constant 0 : i32
    return %c0_i32, %c0_i32_0, %c0_i32_1 : i32, i32, i32
  }
  func.func @transform_4(%arg0: i32) -> (i32, i32, i32, i32) {
    %c0_i32 = arith.constant 0 : i32
    %c0_i32_0 = arith.constant 0 : i32
    %c0_i32_1 = arith.constant 0 : i32
    %c0_i32_2 = arith.constant 0 : i32
    %c0_i32_3 = arith.constant 0 : i32
    return %c0_i32, %c0_i32_0, %c0_i32_1, %c0_i32_2 : i32, i32, i32, i32
  }
  func.func @transform_5(%arg0: i32) -> (i32, i32, i32) {
    %c0_i32 = arith.constant 0 : i32
    %c0_i32_0 = arith.constant 0 : i32
    %c0_i32_1 = arith.constant 0 : i32
    %c0_i32_2 = arith.constant 0 : i32
    return %c0_i32, %c0_i32_0, %c0_i32_1 : i32, i32, i32
  }
  func.func @transform_6(%arg0: i32) -> (i32, i32, i32, i32) {
    %c0_i32 = arith.constant 0 : i32
    %c0_i32_0 = arith.constant 0 : i32
    %c0_i32_1 = arith.constant 0 : i32
    %c0_i32_2 = arith.constant 0 : i32
    %c0_i32_3 = arith.constant 0 : i32
    return %c0_i32, %c0_i32_0, %c0_i32_1, %c0_i32_2 : i32, i32, i32, i32
  }
  func.func @transform_7(%arg0: i32) -> (i32, i32) {
    %c0_i32 = arith.constant 0 : i32
    %c0_i32_0 = arith.constant 0 : i32
    %c0_i32_1 = arith.constant 0 : i32
    return %c0_i32, %c0_i32_0 : i32, i32
  }
  func.func @transform_8(%arg0: i32) -> (i32, i32, i32) {
    %c0_i32 = arith.constant 0 : i32
    %c0_i32_0 = arith.constant 0 : i32
    %c0_i32_1 = arith.constant 0 : i32
    %c0_i32_2 = arith.constant 0 : i32
    return %c0_i32, %c0_i32_0, %c0_i32_1 : i32, i32, i32
  }
  func.func @transform_9(%arg0: i32) -> (i32, i32) {
    %c0_i32 = arith.constant 0 : i32
    %c0_i32_0 = arith.constant 0 : i32
    return %c0_i32, %arg0 : i32, i32
  }
}

</mosaic_0001>

<bundles_post_ra>
// kernel: tpu_custom_call.1
= control target key start
LH: loop header
LB: loop body
LE: loop exit
PB: predicated region body
PF: predicated region fallthrough
CT: control target
= control target key end

     0   :  { %v2453_v1 = vmov 0   ;;  %v2454_v3 = vmov 0.0   ;;  %s3039_s0 = inlined_call_operand.vmem [shape: f32[8,512], index: 0, kind: input, shape index: {}]   ;;  %s3040_s1 = inlined_call_operand.vmem [shape: f32[2,64,8], index: 1, kind: input, shape index: {}]   ;;  %s3041_s2 = inlined_call_operand.vmem [shape: f32[2,64,64], index: 2, kind: input, shape index: {}]   ;;  %s3042_s3 = inlined_call_operand.vmem [shape: f32[2,16,64], index: 3, kind: input, shape index: {}]   ;;  %s3043_s4 = inlined_call_operand.vmem [shape: f32[2,2,64,1], index: 4, kind: input, shape index: {}]   ;;  %s3044_s5 = inlined_call_operand.vmem [shape: f32[2,16,1], index: 5, kind: input, shape index: {}]   ;;  %s3045_s6 = inlined_call_operand.vmem [shape: f32[2,2,8,1], index: 6, kind: input, shape index: {}]   ;;  %s3046_s7 = inlined_call_operand.vmem [shape: f32[8,8], index: 7, kind: input, shape index: {}]   ;;  %s3047_s8 = inlined_call_operand.vmem [shape: f32[2,8,1], index: 8, kind: input, shape index: {}]   ;;  %s3048_s9 = inlined_call_operand.hbm [shape: f32[8,512], index: 9, kind: output, shape index: {}]  }
   0x1   :  { %v2509_v0 = vld [vmem:[%s3045_s6 + $0x10] sm:$0xff]  ;;  %2395 = vset.pattern.permute.xlu0 %v2453_v1  ;;  %2396 = vset.pattern.permute.xlu1 %v2453_v1  ;;  %v2148_v2 = vld [vmem:[%s3043_s4 + $0x80] sm:$0xff]  ;;  %v2151_v4 = vld [vmem:[%s3043_s4 + $0x98] sm:$0xff] }
   0x2   :  { %88 = vperm.xlu0 %2395, %v2509_v0   ;;  %242 = vmatprep.mubr.f32.mxu0 %v2454_v3  ;;  %v34_v5 = vld [vmem:[%s3039_s0 + $0x8] sm:$0xff]  ;;  %v36_v6 = vld [vmem:[%s3039_s0 + $0x18] sm:$0xff]  ;;  %v33_v7 = vld [vmem:[%s3039_s0] sm:$0xff] }
   0x3   :  { %355 = vmatprep.mubr.f32.mxu1 %v2454_v3  ;;  %v38_v8 = vmul.f32 0.25, %v34_v5  ;;  %v40_v9 = vmul.f32 0.25, %v36_v6  ;;  %v37_v10 = vmul.f32 0.25, %v33_v7  ;;  %v35_v11 = vld [vmem:[%s3039_s0 + $0x10] sm:$0xff] }
   0x6   :  { %115 = vperm.xlu0 %2395, %v2148_v2  }
   0x7   :  { %14 = vsyncpa [#allocation3], 0  ;;  %v42_v12 = vadd.f32 1.0, %v38_v8  ;;  %v54_v13 = vsub.f32 1.0, %v38_v8  ;;  %v44_v14 = vadd.f32 1.0, %v40_v9  ;;  %v39_v15 = vmul.f32 0.25, %v35_v11 }
   0x8   :  { %v2149_v16 = vld [vmem:[%s3043_s4 + $0x88] sm:$0xff]  ;;  %v56_v18 = vsub.f32 1.0, %v40_v9  ;;  %v41_v19 = vadd.f32 1.0, %v37_v10  ;;  %v53_v20 = vsub.f32 1.0, %v37_v10  ;;  %v2150_v22 = vld [vmem:[%s3043_s4 + $0x90] sm:$0xff]  ;;  %v2155_v23 = vld [vmem:[%s3043_s4 + $0xb8] sm:$0xff] }
   0x9   :  { %v2153_v17 = vld [vmem:[%s3043_s4 + $0xa8] sm:$0xff]  ;;  %120 = vperm.xlu1 %2396, %v2149_v16   ;;  %2397 = vlog2.f32 %v42_v12  ;;  %v43_v21 = vadd.f32 1.0, %v39_v15  ;;  %v55_v24 = vsub.f32 1.0, %v39_v15  ;;  %v2152_v25 = vld [vmem:[%s3043_s4 + $0xa0] sm:$0xff]  ;;  %v2154_v28 = vld [vmem:[%s3043_s4 + $0xb0] sm:$0xff]  ;;  %v85_v56 = vsub.f32 1.0, %v2509_v0 }
   0xa   :  { %130 = vperm.xlu0 %2395, %v2151_v4   ;;  %2399 = vlog2.f32 %v54_v13  ;;  %v2181_v26 = vld [vmem:[%s3043_s4 + $0xc8] sm:$0xff]  ;;  %v2183_v30 = vld [vmem:[%s3043_s4 + $0xd8] sm:$0xff]  ;;  %v2180_v39 = vld [vmem:[%s3043_s4 + $0xc0] sm:$0xff]  ;;  %vm153_vm0 = vcmask 64512   ;;  %vm494_vm1 = vcmask 523264  }
   0xb   :  { %2401 = vlog2.f32 %v44_v14  ;;  %v2185_v41 = vld [vmem:[%s3043_s4 + $0xe8] sm:$0xff]  ;;  %v2182_v49 = vld [vmem:[%s3043_s4 + $0xd0] sm:$0xff]  ;;  %v2187_v50 = vld [vmem:[%s3043_s4 + $0xf8] sm:$0xff] }
   0xc   :  { %2403 = vlog2.f32 %v56_v18  ;;  %v2184_v53 = vld [vmem:[%s3043_s4 + $0xe0] sm:$0xff]  ;;  %v2139_v54 = vld [vmem:[%s3045_s6 + $0x18] sm:$0xff]  ;;  %v2186_v55 = vld [vmem:[%s3043_s4 + $0xf0] sm:$0xff] }
   0xd   :  { %125 = vperm.xlu1 %2396, %v2150_v22   ;;  %2405 = vlog2.f32 %v41_v19  ;;  %v2206_v57 = vld [vmem:[%s3044_s5 + $0x10] sm:$0xff]  ;;  %v1028_v58 = vld [vmem:[%s3043_s4] sm:$0xff]  ;;  %v2207_v59 = vld [vmem:[%s3044_s5 + $0x18] sm:$0xff] }
   0xe   :  { %140 = vperm.xlu0 %2395, %v2153_v17   ;;  %2407 = vlog2.f32 %v53_v20  ;;  %v1030_v60 = vld [vmem:[%s3043_s4 + $0x10] sm:$0xff]  ;;  %v1007_v61 = vld [vmem:[%s3045_s6] sm:$0xff]  ;;  %v1029_v63 = vld [vmem:[%s3043_s4 + $0x8] sm:$0xff] }
   0xf   :  { %2409 = vlog2.f32 %v43_v21  ;;  %v1032_v62 = vld [vmem:[%s3043_s4 + $0x20] sm:$0xff]  ;;  %v1034_v0 = vld [vmem:[%s3043_s4 + $0x30] sm:$0xff]  ;;  %v1031_v1 = vld [vmem:[%s3043_s4 + $0x18] sm:$0xff]  ;;  %v1010_v17 = vsub.f32 1.0, %v1007_v61 }
  0x10   :  { %2411 = vlog2.f32 %v55_v24  ;;  %v2229_v2 = vld [vmem:[%s3043_s4 + $0x40] sm:$0xff]  ;;  %v1033_v4 = vld [vmem:[%s3043_s4 + $0x28] sm:$0xff]  ;;  %v2231_v5 = vld [vmem:[%s3043_s4 + $0x50] sm:$0xff] }
  0x11   :  { %135 = vperm.xlu1 %2396, %v2152_v25   ;;  %v1035_v6 = vld [vmem:[%s3043_s4 + $0x38] sm:$0xff]  ;;  %v2233_v7 = vld [vmem:[%s3043_s4 + $0x60] sm:$0xff]  ;;  %v2230_v8 = vld [vmem:[%s3043_s4 + $0x48] sm:$0xff] }
  0x12   :  { %150 = vperm.xlu0 %2395, %v2155_v23   ;;  %v2235_v9 = vld [vmem:[%s3043_s4 + $0x70] sm:$0xff]  ;;  %v2232_v10 = vld [vmem:[%s3043_s4 + $0x58] sm:$0xff]  ;;  %v1699_v11 = vld [vmem:[%s3044_s5] sm:$0xff] }
  0x13   :  { %v2398_v27 = vpop.eup %2397  ;;  %v2234_v12 = vld [vmem:[%s3043_s4 + $0x68] sm:$0xff]  ;;  %v2236_v14 = vld [vmem:[%s3043_s4 + $0x78] sm:$0xff]  ;;  %v1954_v15 = vld [vmem:[%s3047_s8] sm:$0xff] }
  0x14   :  { %v2400_v29 = vpop.eup %2399  ;;  %v2556_v32 = vmul.f32 0.6931472, %v2398_v27  ;;  %v1700_v13 = vld [vmem:[%s3044_s5 + $0x8] sm:$0xff] }
  0x15   :  { %145 = vperm.xlu1 %2396, %v2154_v28   ;;  %v2402_v31 = vpop.eup %2401  ;;  %v2558_v33 = vmul.f32 0.6931472, %v2400_v29  ;;  %v2212_v16 = vld [vmem:[%s3045_s6 + $0x8] sm:$0xff] }
  0x16   :  { %461 = vperm.xlu0 %2395, %v2181_v26   ;;  %v2404_v34 = vpop.eup %2403  ;;  %v2564_v37 = vmul.f32 0.6931472, %v2402_v31  ;;  %v2263_v18 = vld [vmem:[%s3047_s8 + $0x8] sm:$0xff] }
  0x17   :  { %v2406_v35 = vpop.eup %2405  ;;  %v2562_v36 = vadd.f32 %v2558_v33, %v2556_v32  ;;  %v2566_v38 = vmul.f32 0.6931472, %v2404_v34  ;;  %v66_v19 = vsub.f32 %v2556_v32, %v2558_v33  ;;  %v2140_v32 = vld [vmem:[%s3040_s1 + $0x40] sm:$0xff]  ;;  %v2141_v33 = vld [vmem:[%s3040_s1 + $0x48] sm:$0xff]  ;;  %v2142_v34 = vld [vmem:[%s3040_s1 + $0x50] sm:$0xff] }
  0x18   :  { %v2408_v40 = vpop.eup %2407  ;;  %v2578_v45 = vmul.f32 0.6931472, %v2406_v35  ;;  %v2143_v35 = vld [vmem:[%s3040_s1 + $0x58] sm:$0xff] }
  0x19   :  { %456 = vperm.xlu1 %2396, %v2180_v39   ;;  %v2410_v42 = vpop.eup %2409  ;;  %v2576_v43 = vadd.f32 %v2566_v38, %v2564_v37  ;;  %v2580_v46 = vmul.f32 0.6931472, %v2408_v40  ;;  %v68_v20 = vsub.f32 %v2564_v37, %v2566_v38  ;;  %v2690_v23 = vmul.f32 0.5, %v66_v19  ;;  %v2144_v37 = vld [vmem:[%s3040_s1 + $0x60] sm:$0xff]  ;;  %v2145_v38 = vld [vmem:[%s3040_s1 + $0x68] sm:$0xff]  ;;  %v2146_v39 = vld [vmem:[%s3040_s1 + $0x70] sm:$0xff] }
  0x1a   :  { %471 = vperm.xlu0 %2395, %v2183_v30   ;;  %v2412_v44 = vpop.eup %2411  ;;  %v2582_v47 = vmul.f32 0.6931472, %v2410_v42  ;;  %v2147_v40 = vld [vmem:[%s3040_s1 + $0x78] sm:$0xff] }
  0x1b   :  { %v2584_v48 = vmul.f32 0.6931472, %v2412_v44  ;;  %v2594_v51 = vadd.f32 %v2580_v46, %v2578_v45  ;;  %v65_v21 = vsub.f32 %v2578_v45, %v2580_v46  ;;  %v2692_v24 = vmul.f32 0.5, %v68_v20 }
  0x1d   :  { %466 = vperm.xlu1 %2396, %v2182_v49   ;;  %v2598_v52 = vadd.f32 %v2584_v48, %v2582_v47  ;;  %v67_v22 = vsub.f32 %v2582_v47, %v2584_v48  ;;  %v2694_v25 = vmul.f32 0.5, %v65_v21 }
  0x1e   :  { %481 = vperm.xlu0 %2395, %v2185_v41  }
  0x1f   :  { %v2696_v26 = vmul.f32 0.5, %v67_v22 }
  0x21   :  { %476 = vperm.xlu1 %2396, %v2184_v53  }
  0x22   :  { %491 = vperm.xlu0 %2395, %v2187_v50  }
  0x25   :  { %486 = vperm.xlu1 %2396, %v2186_v55  }
  0x26   :  { %959 = vperm.xlu0 %2395, %v2139_v54  }
  0x29   :  { %785 = vperm.xlu1 %2396, %v2206_v57  }
  0x2a   :  { %988 = vperm.xlu0 %2395, %v85_v56  }
  0x2d   :  { %790 = vperm.xlu1 %2396, %v2207_v59  }
  0x2e   :  { %1038 = vperm.xlu0 %2395, %v1028_v58  }
  0x31   :  { %1013 = vperm.xlu1 %2396, %v1007_v61  }
  0x32   :  { %1048 = vperm.xlu0 %2395, %v1030_v60  }
  0x35   :  { %1043 = vperm.xlu1 %2396, %v1029_v63  }
  0x36   :  { %1058 = vperm.xlu0 %2395, %v1032_v62  }
  0x39   :  { %1053 = vperm.xlu1 %2396, %v1031_v1  }
  0x3a   :  { %1068 = vperm.xlu0 %2395, %v1034_v0  }
  0x3d   :  { %1063 = vperm.xlu1 %2396, %v1033_v4  }
  0x3e   :  { %1377 = vperm.xlu0 %2395, %v2229_v2  }
  0x41   :  { %1073 = vperm.xlu1 %2396, %v1035_v6  }
  0x42   :  { %1387 = vperm.xlu0 %2395, %v2231_v5  }
  0x45   :  { %1382 = vperm.xlu1 %2396, %v2230_v8  }
  0x46   :  { %1397 = vperm.xlu0 %2395, %v2233_v7  }
  0x49   :  { %1392 = vperm.xlu1 %2396, %v2232_v10  }
  0x4a   :  { %1407 = vperm.xlu0 %2395, %v2235_v9  }
  0x4d   :  { %1402 = vperm.xlu1 %2396, %v2234_v12  }
  0x4e   :  { %1703 = vperm.xlu0 %2395, %v1699_v11  }
  0x51   :  { %1412 = vperm.xlu1 %2396, %v2236_v14  }
  0x52   :  { %1708 = vperm.xlu0 %2395, %v1700_v13  }
  0x55   :  { %1877 = vperm.xlu1 %2396, %v2212_v16  }
  0x56   :  { %1957 = vperm.xlu0 %2395, %v1954_v15  }
  0x59   :  { %1906 = vperm.xlu1 %2396, %v1010_v17  }
  0x5d   :  { %2109 = vperm.xlu1 %2396, %v2263_v18  }
  0x81   :  { %v89_v27 = vpop.permute.xlu0 %88 }
  0x82   :  { %v2699_v28 = vmul.f32 %v89_v27, %v2690_v23  ;;  %v2702_v29 = vmul.f32 %v89_v27, %v2692_v24  ;;  %v2705_v30 = vmul.f32 %v89_v27, %v2694_v25  ;;  %v2708_v31 = vmul.f32 %v89_v27, %v2696_v26 }
  0x84   :  { %178 = vmatprep.subr.mxu0 %v2699_v28  ;;  %291 = vmatprep.subr.mxu1 %v2702_v29 }
  0x85   :  { %179 = vmatpush1.msra.mxu0 %v2705_v30  ;;  %292 = vmatpush1.msra.mxu1 %v2708_v31  ;;  %v116_v46 = vpop.permute.xlu0 %115 }
  0x86   :  { %2156 = vmatmul.mubr.msk.f32.vlgmr.msra.gmra.mrb[0].mxu0 %vm153_vm0, %v2140_v32  ;;  %2164 = vmatmul.mubr.msk.f32.vlgmr.msra.gmra.mrb[0].mxu1 %vm153_vm0, %v2140_v32 }
  0x87   :  { %248 = vmatprep.mubr.f32.mxu0 %v2454_v3  ;;  %361 = vmatprep.mubr.f32.mxu1 %v2454_v3 }
  0x88   :  { %v121_v47 = vpop.permute.xlu1 %120 }
  0x89   :  { %v131_v16 = vpop.permute.xlu0 %130 }
  0x8a   :  { %2157 = vmatmul.mubr.msk.f32.gmra.mrb[2].mxu0 %vm153_vm0, %v2141_v33  ;;  %2165 = vmatmul.mubr.msk.f32.gmra.mrb[2].mxu1 %vm153_vm0, %v2141_v33 }
  0x8b   :  { %254 = vmatprep.mubr.f32.mxu0 %v2454_v3  ;;  %367 = vmatprep.mubr.f32.mxu1 %v2454_v3 }
  0x8c   :  { %v126_v13 = vpop.permute.xlu1 %125 }
  0x8e   :  { %2158 = vmatmul.mubr.msk.f32.gmra.mrb[4].mxu0 %vm153_vm0, %v2142_v34  ;;  %2166 = vmatmul.mubr.msk.f32.gmra.mrb[4].mxu1 %vm153_vm0, %v2142_v34 }
  0x8f   :  { %260 = vmatprep.mubr.f32.mxu0 %v2454_v3  ;;  %373 = vmatprep.mubr.f32.mxu1 %v2454_v3 }
  0x92   :  { %2159 = vmatmul.mubr.msk.f32.gmra.mrb[6].mxu0 %vm153_vm0, %v2143_v35  ;;  %2167 = vmatmul.mubr.msk.f32.gmra.mrb[6].mxu1 %vm153_vm0, %v2143_v35 }
  0x93   :  { %266 = vmatprep.mubr.f32.mxu0 %v2454_v3  ;;  %379 = vmatprep.mubr.f32.mxu1 %v2454_v3 }
  0x96   :  { %2160 = vmatmul.mubr.msk.f32.gmra.mrb[8].mxu0 %vm153_vm0, %v2144_v37  ;;  %2168 = vmatmul.mubr.msk.f32.gmra.mrb[8].mxu1 %vm153_vm0, %v2144_v37 }
  0x97   :  { %272 = vmatprep.mubr.f32.mxu0 %v2454_v3  ;;  %385 = vmatprep.mubr.f32.mxu1 %v2454_v3 }
  0x9a   :  { %2161 = vmatmul.mubr.msk.f32.gmra.mrb[10].mxu0 %vm153_vm0, %v2145_v38  ;;  %2169 = vmatmul.mubr.msk.f32.gmra.mrb[10].mxu1 %vm153_vm0, %v2145_v38 }
  0x9b   :  { %278 = vmatprep.mubr.f32.mxu0 %v2454_v3  ;;  %391 = vmatprep.mubr.f32.mxu1 %v2454_v3 }
  0x9e   :  { %2162 = vmatmul.mubr.msk.f32.gmra.mrb[12].mxu0 %vm153_vm0, %v2146_v39  ;;  %2170 = vmatmul.mubr.msk.f32.gmra.mrb[12].mxu1 %vm153_vm0, %v2146_v39 }
  0x9f   :  { %284 = vmatprep.mubr.f32.mxu0 %v2454_v3  ;;  %397 = vmatprep.mubr.f32.mxu1 %v2454_v3 }
  0xa2   :  { %2163 = vmatmul.mubr.msk.f32.gmra.mrb[14].mxu0 %vm153_vm0, %v2147_v40  ;;  %2171 = vmatmul.mubr.msk.f32.gmra.mrb[14].mxu1 %vm153_vm0, %v2147_v40 }
  0xa3   :  { %583 = vmatprep.mubr.f32.mxu0 %v2454_v3  ;;  %696 = vmatprep.mubr.f32.mxu1 %v2454_v3 }
 0x159   :  { %v244_v41 = vpop.f32.mrb[0].mxu0  ;;  %v357_v42 = vpop.f32.mrb[0].mxu1 }
 0x15a   :  { %v246_v44 = vpop.f32.mrb[1].mxu0  ;;  %v359_v45 = vpop.f32.mrb[1].mxu1  ;;  %v245_v48 = vadd.f32 %v244_v41, %v116_v46  ;;  %v358_v49 = vadd.f32 %v357_v42, %v116_v46 }
 0x15b   :  { %v247_v50 = vadd.f32 %v246_v44, %v116_v46  ;;  %v360_v53 = vadd.f32 %v359_v45, %v116_v46 }
 0x15c   :  { %v404_v62 = vmax.f32 %v245_v48, 0.0  ;;  %v406_v63 = vmax.f32 %v358_v49, 0.0 }
 0x15d   :  { %v250_v54 = vpop.f32.mrb[2].mxu0  ;;  %v363_v55 = vpop.f32.mrb[2].mxu1  ;;  %v405_v2 = vmax.f32 %v247_v50, 0.0  ;;  %v407_v4 = vmax.f32 %v360_v53, 0.0 }
 0x15e   :  { %v251_v56 = vadd.f32 %v250_v54, %v121_v47  ;;  %v364_v57 = vadd.f32 %v363_v55, %v121_v47  ;;  %v252_v58 = vpop.f32.mrb[3].mxu0  ;;  %v365_v59 = vpop.f32.mrb[3].mxu1 }
 0x15f   :  { %v253_v60 = vadd.f32 %v252_v58, %v121_v47  ;;  %v366_v61 = vadd.f32 %v365_v59, %v121_v47  ;;  %v136_v55 = vpop.permute.xlu1 %135  ;;  %v141_v58 = vpop.permute.xlu0 %140 }
 0x160   :  { %v408_v0 = vmax.f32 %v251_v56, 0.0  ;;  %v410_v1 = vmax.f32 %v364_v57, 0.0 }
 0x161   :  { %v409_v5 = vmax.f32 %v253_v60, 0.0  ;;  %v411_v6 = vmax.f32 %v366_v61, 0.0  ;;  %v256_v7 = vpop.f32.mrb[4].mxu0  ;;  %v369_v8 = vpop.f32.mrb[4].mxu1 }
 0x162   :  { %v2266_v9 = vpack.c.bf16 %v408_v0, %v404_v62  ;;  %v2282_v10 = vpack.c.bf16 %v410_v1, %v406_v63  ;;  %v258_v11 = vpop.f32.mrb[5].mxu0  ;;  %v371_v12 = vpop.f32.mrb[5].mxu1  ;;  %v257_v17 = vadd.f32 %v256_v7, %v126_v13  ;;  %v370_v18 = vadd.f32 %v369_v8, %v126_v13 }
 0x163   :  { %v2264_v14 = vpack.c.bf16 %v409_v5, %v405_v2  ;;  %v2280_v15 = vpack.c.bf16 %v411_v6, %v407_v4  ;;  %v259_v19 = vadd.f32 %v258_v11, %v126_v13  ;;  %v372_v20 = vadd.f32 %v371_v12, %v126_v13 }
 0x164   :  { %v412_v38 = vmax.f32 %v257_v17, 0.0  ;;  %v414_v39 = vmax.f32 %v370_v18, 0.0 }
 0x165   :  { %v262_v21 = vpop.f32.mrb[6].mxu0  ;;  %v375_v22 = vpop.f32.mrb[6].mxu1  ;;  %2265 = vmatprep.subr.bf16.mxu0 %v2264_v14  ;;  %2281 = vmatprep.subr.bf16.mxu1 %v2280_v15  ;;  %v413_v42 = vmax.f32 %v259_v19, 0.0  ;;  %v415_v44 = vmax.f32 %v372_v20, 0.0 }
 0x166   :  { %v263_v27 = vadd.f32 %v262_v21, %v131_v16  ;;  %v376_v32 = vadd.f32 %v375_v22, %v131_v16  ;;  %v264_v33 = vpop.f32.mrb[7].mxu0  ;;  %v377_v34 = vpop.f32.mrb[7].mxu1  ;;  %2267 = vmatpush1.bf16.msra.mxu0 %v2266_v9  ;;  %2283 = vmatpush1.bf16.msra.mxu1 %v2282_v10 }
 0x167   :  { %v265_v35 = vadd.f32 %v264_v33, %v131_v16  ;;  %v378_v37 = vadd.f32 %v377_v34, %v131_v16  ;;  %v146_v22 = vpop.permute.xlu1 %145  ;;  %v151_v33 = vpop.permute.xlu0 %150 }
 0x168   :  { %v416_v40 = vmax.f32 %v263_v27, 0.0  ;;  %v418_v41 = vmax.f32 %v376_v32, 0.0 }
 0x169   :  { %v417_v45 = vmax.f32 %v265_v35, 0.0  ;;  %v419_v46 = vmax.f32 %v378_v37, 0.0  ;;  %v268_v47 = vpop.f32.mrb[8].mxu0  ;;  %v381_v48 = vpop.f32.mrb[8].mxu1 }
 0x16a   :  { %v2270_v49 = vpack.c.bf16 %v416_v40, %v412_v38  ;;  %v2286_v50 = vpack.c.bf16 %v418_v41, %v414_v39  ;;  %v270_v53 = vpop.f32.mrb[9].mxu0  ;;  %v383_v54 = vpop.f32.mrb[9].mxu1  ;;  %v269_v59 = vadd.f32 %v268_v47, %v136_v55  ;;  %v382_v60 = vadd.f32 %v381_v48, %v136_v55 }
 0x16b   :  { %v2268_v56 = vpack.c.bf16 %v417_v45, %v413_v42  ;;  %v2284_v57 = vpack.c.bf16 %v419_v46, %v415_v44  ;;  %v271_v61 = vadd.f32 %v270_v53, %v136_v55  ;;  %v384_v62 = vadd.f32 %v383_v54, %v136_v55 }
 0x16c   :  { %v420_v8 = vmax.f32 %v269_v59, 0.0  ;;  %v422_v9 = vmax.f32 %v382_v60, 0.0 }
 0x16d   :  { %v274_v63 = vpop.f32.mrb[10].mxu0  ;;  %v387_v0 = vpop.f32.mrb[10].mxu1  ;;  %2269 = vmatprep.subr.bf16.mxu0 %v2268_v56  ;;  %2285 = vmatprep.subr.bf16.mxu1 %v2284_v57  ;;  %v421_v12 = vmax.f32 %v271_v61, 0.0  ;;  %v423_v13 = vmax.f32 %v384_v62, 0.0  ;;  %v2172_v62 = vld [vmem:[%s3041_s2 + $0x40] sm:$0xff] }
 0x16e   :  { %v275_v1 = vadd.f32 %v274_v63, %v141_v58  ;;  %v388_v2 = vadd.f32 %v387_v0, %v141_v58  ;;  %v276_v4 = vpop.f32.mrb[11].mxu0  ;;  %v389_v5 = vpop.f32.mrb[11].mxu1  ;;  %2271 = vmatpush1.bf16.msra.mxu0 %v2270_v49  ;;  %2287 = vmatpush1.bf16.msra.mxu1 %v2286_v50  ;;  %v2173_v63 = vld [vmem:[%s3041_s2 + $0x48] sm:$0xff]  ;;  %v2174_v0 = vld [vmem:[%s3041_s2 + $0x50] sm:$0xff] }
 0x16f   :  { %v277_v6 = vadd.f32 %v276_v4, %v141_v58  ;;  %v390_v7 = vadd.f32 %v389_v5, %v141_v58  ;;  %v2177_v4 = vld [vmem:[%s3041_s2 + $0x68] sm:$0xff]  ;;  %v2178_v5 = vld [vmem:[%s3041_s2 + $0x70] sm:$0xff] }
 0x170   :  { %v424_v10 = vmax.f32 %v275_v1, 0.0  ;;  %v426_v11 = vmax.f32 %v388_v2, 0.0  ;;  %v2175_v1 = vld [vmem:[%s3041_s2 + $0x58] sm:$0xff]  ;;  %v2176_v2 = vld [vmem:[%s3041_s2 + $0x60] sm:$0xff] }
 0x171   :  { %v425_v14 = vmax.f32 %v277_v6, 0.0  ;;  %v427_v15 = vmax.f32 %v390_v7, 0.0  ;;  %v280_v16 = vpop.f32.mrb[12].mxu0  ;;  %v393_v17 = vpop.f32.mrb[12].mxu1  ;;  %v2179_v6 = vld [vmem:[%s3041_s2 + $0x78] sm:$0xff] }
 0x172   :  { %v2274_v18 = vpack.c.bf16 %v424_v10, %v420_v8  ;;  %v2290_v19 = vpack.c.bf16 %v426_v11, %v422_v9  ;;  %v282_v20 = vpop.f32.mrb[13].mxu0  ;;  %v395_v21 = vpop.f32.mrb[13].mxu1  ;;  %v281_v34 = vadd.f32 %v280_v16, %v146_v22  ;;  %v394_v35 = vadd.f32 %v393_v17, %v146_v22 }
 0x173   :  { %v2272_v27 = vpack.c.bf16 %v425_v14, %v421_v12  ;;  %v2288_v32 = vpack.c.bf16 %v427_v15, %v423_v13  ;;  %v283_v37 = vadd.f32 %v282_v20, %v146_v22  ;;  %v396_v38 = vadd.f32 %v395_v21, %v146_v22  ;;  %v457_v11 = vpop.permute.xlu1 %456  ;;  %v462_v12 = vpop.permute.xlu0 %461 }
 0x174   :  { %v428_v48 = vmax.f32 %v281_v34, 0.0  ;;  %v430_v49 = vmax.f32 %v394_v35, 0.0 }
 0x175   :  { %v286_v39 = vpop.f32.mrb[14].mxu0  ;;  %v399_v40 = vpop.f32.mrb[14].mxu1  ;;  %2273 = vmatprep.subr.bf16.mxu0 %v2272_v27  ;;  %2289 = vmatprep.subr.bf16.mxu1 %v2288_v32  ;;  %v429_v54 = vmax.f32 %v283_v37, 0.0  ;;  %v431_v55 = vmax.f32 %v396_v38, 0.0 }
 0x176   :  { %v287_v41 = vadd.f32 %v286_v39, %v151_v33  ;;  %v400_v42 = vadd.f32 %v399_v40, %v151_v33  ;;  %v288_v44 = vpop.f32.mrb[15].mxu0  ;;  %v401_v45 = vpop.f32.mrb[15].mxu1  ;;  %2275 = vmatpush1.bf16.msra.mxu0 %v2274_v18  ;;  %2291 = vmatpush1.bf16.msra.mxu1 %v2290_v19 }
 0x177   :  { %v289_v46 = vadd.f32 %v288_v44, %v151_v33  ;;  %v402_v47 = vadd.f32 %v401_v45, %v151_v33 }
 0x178   :  { %v432_v50 = vmax.f32 %v287_v41, 0.0  ;;  %v434_v53 = vmax.f32 %v400_v42, 0.0 }
 0x179   :  { %v433_v56 = vmax.f32 %v289_v46, 0.0  ;;  %v435_v57 = vmax.f32 %v402_v47, 0.0 }
 0x17a   :  { %v2278_v58 = vpack.c.bf16 %v432_v50, %v428_v48  ;;  %v2294_v59 = vpack.c.bf16 %v434_v53, %v430_v49  ;;  %v467_v49 = vpop.permute.xlu1 %466 }
 0x17b   :  { %v2276_v60 = vpack.c.bf16 %v433_v56, %v429_v54  ;;  %v2292_v61 = vpack.c.bf16 %v435_v57, %v431_v55  ;;  %v472_v54 = vpop.permute.xlu0 %471 }
 0x17d   :  { %2277 = vmatprep.subr.bf16.mxu0 %v2276_v60  ;;  %2293 = vmatprep.subr.bf16.mxu1 %v2292_v61 }
 0x17e   :  { %2279 = vmatpush1.bf16.msra.mxu0 %v2278_v58  ;;  %2295 = vmatpush1.bf16.msra.mxu1 %v2294_v59 }
 0x181   :  { %2188 = vmatmul.mubr.msk.f32.vlgmr.msra.gmra.mrb[16].mxu0 %vm494_vm1, %v2172_v62  ;;  %2196 = vmatmul.mubr.msk.f32.vlgmr.msra.gmra.mrb[16].mxu1 %vm494_vm1, %v2172_v62 }
 0x182   :  { %589 = vmatprep.mubr.f32.mxu0 %v2454_v3  ;;  %702 = vmatprep.mubr.f32.mxu1 %v2454_v3 }
 0x185   :  { %2189 = vmatmul.mubr.msk.f32.gmra.mrb[18].mxu0 %vm494_vm1, %v2173_v63  ;;  %2197 = vmatmul.mubr.msk.f32.gmra.mrb[18].mxu1 %vm494_vm1, %v2173_v63 }
 0x186   :  { %595 = vmatprep.mubr.f32.mxu0 %v2454_v3  ;;  %708 = vmatprep.mubr.f32.mxu1 %v2454_v3 }
 0x189   :  { %2190 = vmatmul.mubr.msk.f32.gmra.mrb[20].mxu0 %vm494_vm1, %v2174_v0  ;;  %2198 = vmatmul.mubr.msk.f32.gmra.mrb[20].mxu1 %vm494_vm1, %v2174_v0 }
 0x18a   :  { %601 = vmatprep.mubr.f32.mxu0 %v2454_v3  ;;  %714 = vmatprep.mubr.f32.mxu1 %v2454_v3 }
 0x18d   :  { %2191 = vmatmul.mubr.msk.f32.gmra.mrb[22].mxu0 %vm494_vm1, %v2175_v1  ;;  %2199 = vmatmul.mubr.msk.f32.gmra.mrb[22].mxu1 %vm494_vm1, %v2175_v1 }
 0x18e   :  { %607 = vmatprep.mubr.f32.mxu0 %v2454_v3  ;;  %720 = vmatprep.mubr.f32.mxu1 %v2454_v3 }
 0x191   :  { %2192 = vmatmul.mubr.msk.f32.gmra.mrb[24].mxu0 %vm494_vm1, %v2176_v2  ;;  %2200 = vmatmul.mubr.msk.f32.gmra.mrb[24].mxu1 %vm494_vm1, %v2176_v2 }
 0x192   :  { %613 = vmatprep.mubr.f32.mxu0 %v2454_v3  ;;  %726 = vmatprep.mubr.f32.mxu1 %v2454_v3 }
 0x195   :  { %2193 = vmatmul.mubr.msk.f32.gmra.mrb[26].mxu0 %vm494_vm1, %v2177_v4  ;;  %2201 = vmatmul.mubr.msk.f32.gmra.mrb[26].mxu1 %vm494_vm1, %v2177_v4 }
 0x196   :  { %619 = vmatprep.mubr.f32.mxu0 %v2454_v3  ;;  %732 = vmatprep.mubr.f32.mxu1 %v2454_v3 }
 0x199   :  { %2194 = vmatmul.mubr.msk.f32.gmra.mrb[28].mxu0 %vm494_vm1, %v2178_v5  ;;  %2202 = vmatmul.mubr.msk.f32.gmra.mrb[28].mxu1 %vm494_vm1, %v2178_v5 }
 0x19a   :  { %625 = vmatprep.mubr.f32.mxu0 %v2454_v3  ;;  %738 = vmatprep.mubr.f32.mxu1 %v2454_v3 }
 0x19d   :  { %2195 = vmatmul.mubr.msk.f32.gmra.mrb[30].mxu0 %vm494_vm1, %v2179_v6  ;;  %2203 = vmatmul.mubr.msk.f32.gmra.mrb[30].mxu1 %vm494_vm1, %v2179_v6 }
 0x19e   :  { %863 = vmatprep.mubr.f32.mxu0 %v2454_v3  ;;  %940 = vmatprep.mubr.f32.mxu1 %v2454_v3 }
 0x254   :  { %v585_v7 = vpop.f32.mrb[16].mxu0  ;;  %v698_v8 = vpop.f32.mrb[16].mxu1 }
 0x255   :  { %v587_v9 = vpop.f32.mrb[17].mxu0  ;;  %v700_v10 = vpop.f32.mrb[17].mxu1  ;;  %v586_v13 = vadd.f32 %v585_v7, %v457_v11  ;;  %v699_v14 = vadd.f32 %v698_v8, %v457_v11 }
 0x256   :  { %v588_v15 = vadd.f32 %v587_v9, %v457_v11  ;;  %v701_v16 = vadd.f32 %v700_v10, %v457_v11 }
 0x257   :  { %v745_v33 = vmax.f32 %v586_v13, 0.0  ;;  %v747_v34 = vmax.f32 %v699_v14, 0.0 }
 0x258   :  { %v591_v17 = vpop.f32.mrb[18].mxu0  ;;  %v704_v18 = vpop.f32.mrb[18].mxu1  ;;  %v746_v38 = vmax.f32 %v588_v15, 0.0  ;;  %v748_v39 = vmax.f32 %v701_v16, 0.0 }
 0x259   :  { %v592_v19 = vadd.f32 %v591_v17, %v462_v12  ;;  %v705_v20 = vadd.f32 %v704_v18, %v462_v12  ;;  %v593_v21 = vpop.f32.mrb[19].mxu0  ;;  %v706_v22 = vpop.f32.mrb[19].mxu1 }
 0x25a   :  { %v594_v27 = vadd.f32 %v593_v21, %v462_v12  ;;  %v707_v32 = vadd.f32 %v706_v22, %v462_v12  ;;  %v477_v18 = vpop.permute.xlu1 %476  ;;  %v482_v21 = vpop.permute.xlu0 %481 }
 0x25b   :  { %v749_v35 = vmax.f32 %v592_v19, 0.0  ;;  %v751_v37 = vmax.f32 %v705_v20, 0.0 }
 0x25c   :  { %v750_v40 = vmax.f32 %v594_v27, 0.0  ;;  %v752_v41 = vmax.f32 %v707_v32, 0.0  ;;  %v597_v42 = vpop.f32.mrb[20].mxu0  ;;  %v710_v44 = vpop.f32.mrb[20].mxu1 }
 0x25d   :  { %v2298_v45 = vpack.c.bf16 %v749_v35, %v745_v33  ;;  %v2314_v46 = vpack.c.bf16 %v751_v37, %v747_v34  ;;  %v599_v47 = vpop.f32.mrb[21].mxu0  ;;  %v712_v48 = vpop.f32.mrb[21].mxu1  ;;  %v598_v55 = vadd.f32 %v597_v42, %v467_v49  ;;  %v711_v56 = vadd.f32 %v710_v44, %v467_v49 }
 0x25e   :  { %v2296_v50 = vpack.c.bf16 %v750_v40, %v746_v38  ;;  %v2312_v53 = vpack.c.bf16 %v752_v41, %v748_v39  ;;  %v600_v57 = vadd.f32 %v599_v47, %v467_v49  ;;  %v713_v58 = vadd.f32 %v712_v48, %v467_v49 }
 0x25f   :  { %v753_v4 = vmax.f32 %v598_v55, 0.0  ;;  %v755_v5 = vmax.f32 %v711_v56, 0.0 }
 0x260   :  { %v603_v59 = vpop.f32.mrb[22].mxu0  ;;  %v716_v60 = vpop.f32.mrb[22].mxu1  ;;  %2297 = vmatprep.subr.bf16.mxu0 %v2296_v50  ;;  %2313 = vmatprep.subr.bf16.mxu1 %v2312_v53  ;;  %v754_v8 = vmax.f32 %v600_v57, 0.0  ;;  %v756_v9 = vmax.f32 %v713_v58, 0.0 }
 0x261   :  { %v604_v61 = vadd.f32 %v603_v59, %v472_v54  ;;  %v717_v62 = vadd.f32 %v716_v60, %v472_v54  ;;  %v605_v63 = vpop.f32.mrb[23].mxu0  ;;  %v718_v0 = vpop.f32.mrb[23].mxu1  ;;  %2299 = vmatpush1.bf16.msra.mxu0 %v2298_v45  ;;  %2315 = vmatpush1.bf16.msra.mxu1 %v2314_v46 }
 0x262   :  { %v606_v1 = vadd.f32 %v605_v63, %v472_v54  ;;  %v719_v2 = vadd.f32 %v718_v0, %v472_v54  ;;  %v487_v60 = vpop.permute.xlu1 %486  ;;  %v492_v63 = vpop.permute.xlu0 %491 }
 0x263   :  { %v757_v6 = vmax.f32 %v604_v61, 0.0  ;;  %v759_v7 = vmax.f32 %v717_v62, 0.0 }
 0x264   :  { %v758_v10 = vmax.f32 %v606_v1, 0.0  ;;  %v760_v11 = vmax.f32 %v719_v2, 0.0  ;;  %v609_v12 = vpop.f32.mrb[24].mxu0  ;;  %v722_v13 = vpop.f32.mrb[24].mxu1 }
 0x265   :  { %v2302_v14 = vpack.c.bf16 %v757_v6, %v753_v4  ;;  %v2318_v15 = vpack.c.bf16 %v759_v7, %v755_v5  ;;  %v611_v16 = vpop.f32.mrb[25].mxu0  ;;  %v724_v17 = vpop.f32.mrb[25].mxu1  ;;  %v610_v22 = vadd.f32 %v609_v12, %v477_v18  ;;  %v723_v27 = vadd.f32 %v722_v13, %v477_v18 }
 0x266   :  { %v2300_v19 = vpack.c.bf16 %v758_v10, %v754_v8  ;;  %v2316_v20 = vpack.c.bf16 %v760_v11, %v756_v9  ;;  %v612_v32 = vadd.f32 %v611_v16, %v477_v18  ;;  %v725_v33 = vadd.f32 %v724_v17, %v477_v18 }
 0x267   :  { %v761_v44 = vmax.f32 %v610_v22, 0.0  ;;  %v763_v45 = vmax.f32 %v723_v27, 0.0 }
 0x268   :  { %v615_v34 = vpop.f32.mrb[26].mxu0  ;;  %v728_v35 = vpop.f32.mrb[26].mxu1  ;;  %2301 = vmatprep.subr.bf16.mxu0 %v2300_v19  ;;  %2317 = vmatprep.subr.bf16.mxu1 %v2316_v20  ;;  %v762_v48 = vmax.f32 %v612_v32, 0.0  ;;  %v764_v49 = vmax.f32 %v725_v33, 0.0  ;;  %v2204_v33 = vld [vmem:[%s3042_s3 + $0x10] sm:$0xff] }
 0x269   :  { %v616_v37 = vadd.f32 %v615_v34, %v482_v21  ;;  %v729_v38 = vadd.f32 %v728_v35, %v482_v21  ;;  %v617_v39 = vpop.f32.mrb[27].mxu0  ;;  %v730_v40 = vpop.f32.mrb[27].mxu1  ;;  %2303 = vmatpush1.bf16.msra.mxu0 %v2302_v14  ;;  %2319 = vmatpush1.bf16.msra.mxu1 %v2318_v15  ;;  %v2205_v34 = vld [vmem:[%s3042_s3 + $0x18] sm:$0xff] }
 0x26a   :  { %v618_v41 = vadd.f32 %v617_v39, %v482_v21  ;;  %v731_v42 = vadd.f32 %v730_v40, %v482_v21  ;;  %v960_v35 = vpop.permute.xlu0 %959 }
 0x26b   :  { %v765_v46 = vmax.f32 %v616_v37, 0.0  ;;  %v767_v47 = vmax.f32 %v729_v38, 0.0  ;;  %v786_v37 = vpop.permute.xlu1 %785 }
 0x26c   :  { %v766_v50 = vmax.f32 %v618_v41, 0.0  ;;  %v768_v53 = vmax.f32 %v731_v42, 0.0  ;;  %v621_v54 = vpop.f32.mrb[28].mxu0  ;;  %v734_v55 = vpop.f32.mrb[28].mxu1 }
 0x26d   :  { %v2306_v56 = vpack.c.bf16 %v765_v46, %v761_v44  ;;  %v2322_v57 = vpack.c.bf16 %v767_v47, %v763_v45  ;;  %v623_v58 = vpop.f32.mrb[29].mxu0  ;;  %v736_v59 = vpop.f32.mrb[29].mxu1  ;;  %v622_v0 = vadd.f32 %v621_v54, %v487_v60  ;;  %v735_v1 = vadd.f32 %v734_v55, %v487_v60 }
 0x26e   :  { %v2304_v61 = vpack.c.bf16 %v766_v50, %v762_v48  ;;  %v2320_v62 = vpack.c.bf16 %v768_v53, %v764_v49  ;;  %v624_v2 = vadd.f32 %v623_v58, %v487_v60  ;;  %v737_v4 = vadd.f32 %v736_v59, %v487_v60 }
 0x26f   :  { %v769_v13 = vmax.f32 %v622_v0, 0.0  ;;  %v771_v14 = vmax.f32 %v735_v1, 0.0  ;;  %v77_v55 = vsub.f32 0.0, %v2594_v51 }
 0x270   :  { %v627_v5 = vpop.f32.mrb[30].mxu0  ;;  %v740_v6 = vpop.f32.mrb[30].mxu1  ;;  %2305 = vmatprep.subr.bf16.mxu0 %v2304_v61  ;;  %2321 = vmatprep.subr.bf16.mxu1 %v2320_v62  ;;  %v770_v17 = vmax.f32 %v624_v2, 0.0  ;;  %v772_v18 = vmax.f32 %v737_v4, 0.0  ;;  %v78_v61 = vsub.f32 0.0, %v2562_v36  ;;  %v80_v62 = vsub.f32 0.0, %v2576_v43 }
 0x271   :  { %v628_v7 = vadd.f32 %v627_v5, %v492_v63  ;;  %v741_v8 = vadd.f32 %v740_v6, %v492_v63  ;;  %v629_v9 = vpop.f32.mrb[31].mxu0  ;;  %v742_v10 = vpop.f32.mrb[31].mxu1  ;;  %2307 = vmatpush1.bf16.msra.mxu0 %v2306_v56  ;;  %2323 = vmatpush1.bf16.msra.mxu1 %v2322_v57  ;;  %v79_v56 = vsub.f32 0.0, %v2598_v52 }
 0x272   :  { %v630_v11 = vadd.f32 %v629_v9, %v492_v63  ;;  %v743_v12 = vadd.f32 %v742_v10, %v492_v63  ;;  %v989_v63 = vpop.permute.xlu0 %988 }
 0x273   :  { %v773_v15 = vmax.f32 %v628_v7, 0.0  ;;  %v775_v16 = vmax.f32 %v741_v8, 0.0 }
 0x274   :  { %v774_v19 = vmax.f32 %v630_v11, 0.0  ;;  %v776_v20 = vmax.f32 %v743_v12, 0.0 }
 0x275   :  { %v2310_v21 = vpack.c.bf16 %v773_v15, %v769_v13  ;;  %v2326_v22 = vpack.c.bf16 %v775_v16, %v771_v14  ;;  %v791_v15 = vpop.permute.xlu1 %790 }
 0x276   :  { %v2308_v27 = vpack.c.bf16 %v774_v19, %v770_v17  ;;  %v2324_v32 = vpack.c.bf16 %v776_v20, %v772_v18 }
 0x278   :  { %2309 = vmatprep.subr.bf16.mxu0 %v2308_v27  ;;  %2325 = vmatprep.subr.bf16.mxu1 %v2324_v32 }
 0x279   :  { %2311 = vmatpush1.bf16.msra.mxu0 %v2310_v21  ;;  %2327 = vmatpush1.bf16.msra.mxu1 %v2326_v22 }
 0x27c   :  { %2208 = vmatmul.mubr.msk.f32.vlgmr.msra.gmra.mrb[32].mxu0 %vm494_vm1, %v2204_v33  ;;  %2210 = vmatmul.mubr.msk.f32.vlgmr.msra.gmra.mrb[32].mxu1 %vm494_vm1, %v2204_v33 }
 0x27d   :  { %869 = vmatprep.mubr.f32.mxu0 %v2454_v3  ;;  %946 = vmatprep.mubr.f32.mxu1 %v2454_v3 }
 0x280   :  { %2209 = vmatmul.mubr.msk.f32.gmra.mrb[34].mxu0 %vm494_vm1, %v2205_v34  ;;  %2211 = vmatmul.mubr.msk.f32.gmra.mrb[34].mxu1 %vm494_vm1, %v2205_v34 }
 0x281   :  { %1164 = vmatprep.mubr.f32.mxu0 %v2454_v3  ;;  %1277 = vmatprep.mubr.f32.mxu1 %v2454_v3 }
 0x34f   :  { %v865_v38 = vpop.f32.mrb[32].mxu0  ;;  %v942_v39 = vpop.f32.mrb[32].mxu1 }
 0x350   :  { %v866_v40 = vadd.f32 %v865_v38, %v786_v37  ;;  %v943_v41 = vadd.f32 %v942_v39, %v786_v37  ;;  %v867_v42 = vpop.f32.mrb[33].mxu0  ;;  %v944_v44 = vpop.f32.mrb[33].mxu1 }
 0x351   :  { %v868_v45 = vadd.f32 %v867_v42, %v786_v37  ;;  %v945_v46 = vadd.f32 %v944_v44, %v786_v37 }
 0x352   :  { %v953_v47 = vmax.f32 %v866_v40, 0.0  ;;  %v955_v48 = vmax.f32 %v943_v41, 0.0 }
 0x353   :  { %v954_v49 = vmax.f32 %v868_v45, 0.0  ;;  %v956_v50 = vmax.f32 %v945_v46, 0.0  ;;  %v871_v53 = vpop.f32.mrb[34].mxu0  ;;  %v948_v54 = vpop.f32.mrb[34].mxu1 }
 0x354   :  { %v962_v57 = vmul.f32 %v960_v35, %v953_v47  ;;  %v964_v58 = vmul.f32 %v960_v35, %v955_v48  ;;  %v873_v59 = vpop.f32.mrb[35].mxu0  ;;  %v950_v60 = vpop.f32.mrb[35].mxu1  ;;  %v872_v16 = vadd.f32 %v871_v53, %v791_v15  ;;  %v949_v17 = vadd.f32 %v948_v54, %v791_v15  ;;  %v1024_v53 = vld [vmem:[%s3040_s1 + $0x20] sm:$0xff]  ;;  %v1025_v54 = vld [vmem:[%s3040_s1 + $0x28] sm:$0xff] }
 0x355   :  { %v963_v0 = vmul.f32 %v960_v35, %v954_v49  ;;  %v965_v1 = vmul.f32 %v960_v35, %v956_v50  ;;  %v874_v18 = vadd.f32 %v873_v59, %v791_v15  ;;  %v951_v19 = vadd.f32 %v950_v60, %v791_v15  ;;  %v1022_v49 = vld [vmem:[%s3040_s1 + $0x10] sm:$0xff]  ;;  %v1023_v50 = vld [vmem:[%s3040_s1 + $0x18] sm:$0xff]  ;;  %v1039_v60 = vpop.permute.xlu0 %1038 }
 0x356   :  { %v970_v2 = vsub.f32 0.0, %v962_v57  ;;  %v999_v4 = vmul.f32 %v989_v63, %v962_v57  ;;  %v972_v5 = vsub.f32 0.0, %v964_v58  ;;  %v1001_v6 = vmul.f32 %v989_v63, %v964_v58 }
 0x357   :  { %v971_v7 = vsub.f32 0.0, %v963_v0  ;;  %v1000_v8 = vmul.f32 %v989_v63, %v963_v0  ;;  %v973_v51 = vsub.f32 0.0, %v965_v1  ;;  %v1002_v9 = vmul.f32 %v989_v63, %v965_v1 }
 0x358   :  { %v974_v52 = vmul.f32 1.442695, %v970_v2  ;;  %v2844_v10 = vsub.f32 %v77_v55, %v999_v4  ;;  %v978_v11 = vmul.f32 1.442695, %v972_v5  ;;  %v2846_v12 = vsub.f32 %v79_v56, %v1001_v6  ;;  %v1026_v55 = vld [vmem:[%s3040_s1 + $0x30] sm:$0xff]  ;;  %v1027_v56 = vld [vmem:[%s3040_s1 + $0x38] sm:$0xff] }
 0x359   :  { %v976_v36 = vmul.f32 1.442695, %v971_v7  ;;  %v2848_v13 = vsub.f32 %v78_v61, %v1000_v8  ;;  %v980_v43 = vmul.f32 1.442695, %v973_v51  ;;  %v2850_v14 = vsub.f32 %v80_v62, %v1002_v9 }
 0x35a   :  { %2413 = vpow2.f32 %v974_v52  ;;  %v966_v20 = vsub.f32 %v2694_v25, %v872_v16  ;;  %v968_v22 = vsub.f32 %v2696_v26, %v949_v17  ;;  %v967_v33 = vsub.f32 %v2690_v23, %v874_v18  ;;  %v1014_v23 = vpop.permute.xlu1 %1013 }
 0x35b   :  { %2415 = vpow2.f32 %v978_v11  ;;  %v969_v37 = vsub.f32 %v2692_v24, %v951_v19 }
 0x35c   :  { %2417 = vpow2.f32 %v976_v36 }
 0x35d   :  { %2419 = vpow2.f32 %v980_v43 }
 0x364   :  { %v2414_v21 = vpop.eup %2413 }
 0x365   :  { %v2416_v27 = vpop.eup %2415  ;;  %v982_v32 = vmul.f32 %v2414_v21, %v966_v20 }
 0x366   :  { %v2418_v34 = vpop.eup %2417  ;;  %v984_v35 = vmul.f32 %v2416_v27, %v968_v22 }
 0x367   :  { %v2420_v38 = vpop.eup %2419  ;;  %v991_v39 = vmul.f32 %v989_v63, %v982_v32  ;;  %v983_v40 = vmul.f32 %v2418_v34, %v967_v33  ;;  %v1049_v32 = vpop.permute.xlu0 %1048 }
 0x368   :  { %v993_v41 = vmul.f32 %v989_v63, %v984_v35  ;;  %v985_v42 = vmul.f32 %v2420_v38, %v969_v37 }
 0x369   :  { %v992_v44 = vmul.f32 %v989_v63, %v983_v40  ;;  %v2857_v45 = vadd.f32 %v991_v39, %v2705_v30 }
 0x36a   :  { %v994_v25 = vmul.f32 %v989_v63, %v985_v42  ;;  %v2860_v26 = vadd.f32 %v993_v41, %v2708_v31  ;;  %v1020_v31 = vld [vmem:[%s3040_s1] sm:$0xff]  ;;  %v1044_v63 = vpop.permute.xlu1 %1043 }
 0x36b   :  { %v2863_v46 = vadd.f32 %v992_v44, %v2699_v28  ;;  %v2875_v30 = vmul.f32 %v1014_v23, %v2857_v45 }
 0x36c   :  { %v2866_v47 = vadd.f32 %v994_v25, %v2702_v29  ;;  %v2882_v28 = vmul.f32 %v1014_v23, %v2860_v26  ;;  %v1021_v29 = vld [vmem:[%s3040_s1 + $0x8] sm:$0xff] }
 0x36d   :  { %v2869_v24 = vmul.f32 %v1014_v23, %v2863_v46 }
 0x36e   :  { %v2872_v48 = vmul.f32 %v1014_v23, %v2866_v47  ;;  %v1054_v39 = vpop.permute.xlu1 %1053 }
 0x36f   :  { %1100 = vmatprep.subr.mxu0 %v2869_v24 }
 0x370   :  { %1213 = vmatprep.subr.mxu1 %v2872_v48  ;;  %1101 = vmatpush1.msra.mxu0 %v2875_v30 }
 0x371   :  { %1214 = vmatpush1.msra.mxu1 %v2882_v28  ;;  %2213 = vmatmul.mubr.msk.f32.vlgmr.msra.gmra.mrb[36].mxu0 %vm153_vm0, %v1020_v31 }
 0x372   :  { %2221 = vmatmul.mubr.msk.f32.vlgmr.msra.gmra.mrb[36].mxu1 %vm153_vm0, %v1020_v31  ;;  %1170 = vmatprep.mubr.f32.mxu0 %v2454_v3 }
 0x373   :  { %1283 = vmatprep.mubr.f32.mxu1 %v2454_v3 }
 0x375   :  { %2214 = vmatmul.mubr.msk.f32.gmra.mrb[38].mxu0 %vm153_vm0, %v1021_v29 }
 0x376   :  { %2222 = vmatmul.mubr.msk.f32.gmra.mrb[38].mxu1 %vm153_vm0, %v1021_v29  ;;  %1176 = vmatprep.mubr.f32.mxu0 %v2454_v3 }
 0x377   :  { %1289 = vmatprep.mubr.f32.mxu1 %v2454_v3 }
 0x379   :  { %2215 = vmatmul.mubr.msk.f32.gmra.mrb[40].mxu0 %vm153_vm0, %v1022_v49 }
 0x37a   :  { %2223 = vmatmul.mubr.msk.f32.gmra.mrb[40].mxu1 %vm153_vm0, %v1022_v49  ;;  %1182 = vmatprep.mubr.f32.mxu0 %v2454_v3 }
 0x37b   :  { %1295 = vmatprep.mubr.f32.mxu1 %v2454_v3 }
 0x37d   :  { %2216 = vmatmul.mubr.msk.f32.gmra.mrb[42].mxu0 %vm153_vm0, %v1023_v50 }
 0x37e   :  { %2224 = vmatmul.mubr.msk.f32.gmra.mrb[42].mxu1 %vm153_vm0, %v1023_v50  ;;  %1188 = vmatprep.mubr.f32.mxu0 %v2454_v3 }
 0x37f   :  { %1301 = vmatprep.mubr.f32.mxu1 %v2454_v3 }
 0x381   :  { %2217 = vmatmul.mubr.msk.f32.gmra.mrb[44].mxu0 %vm153_vm0, %v1024_v53 }
 0x382   :  { %2225 = vmatmul.mubr.msk.f32.gmra.mrb[44].mxu1 %vm153_vm0, %v1024_v53  ;;  %1194 = vmatprep.mubr.f32.mxu0 %v2454_v3 }
 0x383   :  { %1307 = vmatprep.mubr.f32.mxu1 %v2454_v3 }
 0x385   :  { %2218 = vmatmul.mubr.msk.f32.gmra.mrb[46].mxu0 %vm153_vm0, %v1025_v54 }
 0x386   :  { %2226 = vmatmul.mubr.msk.f32.gmra.mrb[46].mxu1 %vm153_vm0, %v1025_v54  ;;  %1200 = vmatprep.mubr.f32.mxu0 %v2454_v3 }
 0x387   :  { %1313 = vmatprep.mubr.f32.mxu1 %v2454_v3 }
 0x389   :  { %2219 = vmatmul.mubr.msk.f32.gmra.mrb[48].mxu0 %vm153_vm0, %v1026_v55 }
 0x38a   :  { %2227 = vmatmul.mubr.msk.f32.gmra.mrb[48].mxu1 %vm153_vm0, %v1026_v55  ;;  %1206 = vmatprep.mubr.f32.mxu0 %v2454_v3 }
 0x38b   :  { %1319 = vmatprep.mubr.f32.mxu1 %v2454_v3 }
 0x38d   :  { %2220 = vmatmul.mubr.msk.f32.gmra.mrb[50].mxu0 %vm153_vm0, %v1027_v56 }
 0x38e   :  { %2228 = vmatmul.mubr.msk.f32.gmra.mrb[50].mxu1 %vm153_vm0, %v1027_v56  ;;  %1503 = vmatprep.mubr.f32.mxu0 %v2454_v3 }
 0x38f   :  { %1616 = vmatprep.mubr.f32.mxu1 %v2454_v3 }
 0x444   :  { %v1166_v57 = vpop.f32.mrb[36].mxu0 }
 0x445   :  { %v1279_v58 = vpop.f32.mrb[36].mxu1  ;;  %v1168_v59 = vpop.f32.mrb[37].mxu0  ;;  %v1167_v62 = vadd.f32 %v1166_v57, %v1039_v60 }
 0x446   :  { %v1281_v61 = vpop.f32.mrb[37].mxu1  ;;  %v1280_v0 = vadd.f32 %v1279_v58, %v1039_v60  ;;  %v1169_v1 = vadd.f32 %v1168_v59, %v1039_v60 }
 0x447   :  { %v1282_v4 = vadd.f32 %v1281_v61, %v1039_v60  ;;  %v1326_v52 = vmax.f32 %v1167_v62, 0.0 }
 0x448   :  { %v1172_v2 = vpop.f32.mrb[38].mxu0  ;;  %v1328_v43 = vmax.f32 %v1280_v0, 0.0  ;;  %v1327_v15 = vmax.f32 %v1169_v1, 0.0 }
 0x449   :  { %v1173_v5 = vadd.f32 %v1172_v2, %v1044_v63  ;;  %v1285_v6 = vpop.f32.mrb[38].mxu1  ;;  %v1174_v7 = vpop.f32.mrb[39].mxu0  ;;  %v1329_v19 = vmax.f32 %v1282_v4, 0.0 }
 0x44a   :  { %v1286_v8 = vadd.f32 %v1285_v6, %v1044_v63  ;;  %v1175_v51 = vadd.f32 %v1174_v7, %v1044_v63  ;;  %v1287_v9 = vpop.f32.mrb[39].mxu1  ;;  %v1059_v2 = vpop.permute.xlu0 %1058 }
 0x44b   :  { %v1330_v11 = vmax.f32 %v1173_v5, 0.0  ;;  %v1288_v36 = vadd.f32 %v1287_v9, %v1044_v63 }
 0x44c   :  { %v1332_v16 = vmax.f32 %v1286_v8, 0.0  ;;  %v1331_v17 = vmax.f32 %v1175_v51, 0.0  ;;  %v1178_v18 = vpop.f32.mrb[40].mxu0  ;;  %v1064_v51 = vpop.permute.xlu1 %1063 }
 0x44d   :  { %v2330_v20 = vpack.c.bf16 %v1330_v11, %v1326_v52  ;;  %v1333_v21 = vmax.f32 %v1288_v36, 0.0  ;;  %v1291_v22 = vpop.f32.mrb[40].mxu1  ;;  %v1180_v27 = vpop.f32.mrb[41].mxu0  ;;  %v1179_v38 = vadd.f32 %v1178_v18, %v1049_v32 }
 0x44e   :  { %v2346_v33 = vpack.c.bf16 %v1332_v16, %v1328_v43  ;;  %v2328_v34 = vpack.c.bf16 %v1331_v17, %v1327_v15  ;;  %v1293_v35 = vpop.f32.mrb[41].mxu1  ;;  %v1292_v40 = vadd.f32 %v1291_v22, %v1049_v32  ;;  %v1181_v41 = vadd.f32 %v1180_v27, %v1049_v32 }
 0x44f   :  { %v2344_v37 = vpack.c.bf16 %v1333_v21, %v1329_v19  ;;  %v1294_v44 = vadd.f32 %v1293_v35, %v1049_v32  ;;  %v1334_v53 = vmax.f32 %v1179_v38, 0.0 }
 0x450   :  { %v1184_v42 = vpop.f32.mrb[42].mxu0  ;;  %2329 = vmatprep.subr.bf16.mxu0 %v2328_v34  ;;  %v1336_v56 = vmax.f32 %v1292_v40, 0.0  ;;  %v1335_v57 = vmax.f32 %v1181_v41, 0.0 }
 0x451   :  { %v1185_v25 = vadd.f32 %v1184_v42, %v1054_v39  ;;  %v1297_v23 = vpop.f32.mrb[42].mxu1  ;;  %2345 = vmatprep.subr.bf16.mxu1 %v2344_v37  ;;  %v1186_v31 = vpop.f32.mrb[43].mxu0  ;;  %2331 = vmatpush1.bf16.msra.mxu0 %v2330_v20  ;;  %v1337_v61 = vmax.f32 %v1294_v44, 0.0 }
 0x452   :  { %v1298_v29 = vadd.f32 %v1297_v23, %v1054_v39  ;;  %v1187_v49 = vadd.f32 %v1186_v31, %v1054_v39  ;;  %v1299_v50 = vpop.f32.mrb[43].mxu1  ;;  %2347 = vmatpush1.bf16.msra.mxu1 %v2346_v33  ;;  %v1069_v42 = vpop.permute.xlu0 %1068 }
 0x453   :  { %v1338_v54 = vmax.f32 %v1185_v25, 0.0  ;;  %v1300_v55 = vadd.f32 %v1299_v50, %v1054_v39 }
 0x454   :  { %v1340_v58 = vmax.f32 %v1298_v29, 0.0  ;;  %v1339_v59 = vmax.f32 %v1187_v49, 0.0  ;;  %v1190_v60 = vpop.f32.mrb[44].mxu0  ;;  %v1074_v49 = vpop.permute.xlu1 %1073 }
 0x455   :  { %v2334_v62 = vpack.c.bf16 %v1338_v54, %v1334_v53  ;;  %v1341_v63 = vmax.f32 %v1300_v55, 0.0  ;;  %v1303_v0 = vpop.f32.mrb[44].mxu1  ;;  %v1192_v1 = vpop.f32.mrb[45].mxu0  ;;  %v1191_v8 = vadd.f32 %v1190_v60, %v1059_v2 }
 0x456   :  { %v2350_v4 = vpack.c.bf16 %v1340_v58, %v1336_v56  ;;  %v2332_v5 = vpack.c.bf16 %v1339_v59, %v1335_v57  ;;  %v1305_v6 = vpop.f32.mrb[45].mxu1  ;;  %v1304_v9 = vadd.f32 %v1303_v0, %v1059_v2  ;;  %v1193_v52 = vadd.f32 %v1192_v1, %v1059_v2 }
 0x457   :  { %v2348_v7 = vpack.c.bf16 %v1341_v63, %v1337_v61  ;;  %v1306_v36 = vadd.f32 %v1305_v6, %v1059_v2  ;;  %v1342_v20 = vmax.f32 %v1191_v8, 0.0 }
 0x458   :  { %v1196_v11 = vpop.f32.mrb[46].mxu0  ;;  %2333 = vmatprep.subr.bf16.mxu0 %v2332_v5  ;;  %v1344_v27 = vmax.f32 %v1304_v9, 0.0  ;;  %v1343_v32 = vmax.f32 %v1193_v52, 0.0 }
 0x459   :  { %v1197_v43 = vadd.f32 %v1196_v11, %v1064_v51  ;;  %v1309_v15 = vpop.f32.mrb[46].mxu1  ;;  %2349 = vmatprep.subr.bf16.mxu1 %v2348_v7  ;;  %v1198_v16 = vpop.f32.mrb[47].mxu0  ;;  %2335 = vmatpush1.bf16.msra.mxu0 %v2334_v62  ;;  %v1345_v37 = vmax.f32 %v1306_v36, 0.0  ;;  %v1358_v11 = vld [vmem:[%s3041_s2] sm:$0xff]  ;;  %v1359_v36 = vld [vmem:[%s3041_s2 + $0x8] sm:$0xff] }
 0x45a   :  { %v1310_v17 = vadd.f32 %v1309_v15, %v1064_v51  ;;  %v1199_v18 = vadd.f32 %v1198_v16, %v1064_v51  ;;  %v1311_v19 = vpop.f32.mrb[47].mxu1  ;;  %2351 = vmatpush1.bf16.msra.mxu1 %v2350_v4  ;;  %v1361_v15 = vld [vmem:[%s3041_s2 + $0x18] sm:$0xff]  ;;  %v1362_v16 = vld [vmem:[%s3041_s2 + $0x20] sm:$0xff] }
 0x45b   :  { %v1346_v21 = vmax.f32 %v1197_v43, 0.0  ;;  %v1312_v22 = vadd.f32 %v1311_v19, %v1064_v51  ;;  %v1360_v43 = vld [vmem:[%s3041_s2 + $0x10] sm:$0xff]  ;;  %v1365_v19 = vld [vmem:[%s3041_s2 + $0x38] sm:$0xff] }
 0x45c   :  { %v1348_v33 = vmax.f32 %v1310_v17, 0.0  ;;  %v1347_v34 = vmax.f32 %v1199_v18, 0.0  ;;  %v1202_v35 = vpop.f32.mrb[48].mxu0  ;;  %v1363_v17 = vld [vmem:[%s3041_s2 + $0x28] sm:$0xff]  ;;  %v1364_v18 = vld [vmem:[%s3041_s2 + $0x30] sm:$0xff] }
 0x45d   :  { %v2338_v38 = vpack.c.bf16 %v1346_v21, %v1342_v20  ;;  %v1349_v39 = vmax.f32 %v1312_v22, 0.0  ;;  %v1315_v40 = vpop.f32.mrb[48].mxu1  ;;  %v1204_v41 = vpop.f32.mrb[49].mxu0  ;;  %v1203_v29 = vadd.f32 %v1202_v35, %v1069_v42 }
 0x45e   :  { %v2354_v44 = vpack.c.bf16 %v1348_v33, %v1344_v27  ;;  %v2336_v25 = vpack.c.bf16 %v1347_v34, %v1343_v32  ;;  %v1317_v23 = vpop.f32.mrb[49].mxu1  ;;  %v1316_v50 = vadd.f32 %v1315_v40, %v1069_v42  ;;  %v1205_v53 = vadd.f32 %v1204_v41, %v1069_v42  ;;  %v1378_v27 = vpop.permute.xlu0 %1377 }
 0x45f   :  { %v2352_v31 = vpack.c.bf16 %v1349_v39, %v1345_v37  ;;  %v1318_v55 = vadd.f32 %v1317_v23, %v1069_v42  ;;  %v1350_v62 = vmax.f32 %v1203_v29, 0.0  ;;  %v1383_v34 = vpop.permute.xlu1 %1382 }
 0x460   :  { %v1208_v54 = vpop.f32.mrb[50].mxu0  ;;  %2337 = vmatprep.subr.bf16.mxu0 %v2336_v25  ;;  %v1352_v1 = vmax.f32 %v1316_v50, 0.0  ;;  %v1351_v2 = vmax.f32 %v1205_v53, 0.0 }
 0x461   :  { %v1209_v56 = vadd.f32 %v1208_v54, %v1074_v49  ;;  %v1321_v57 = vpop.f32.mrb[50].mxu1  ;;  %2353 = vmatprep.subr.bf16.mxu1 %v2352_v31  ;;  %v1210_v58 = vpop.f32.mrb[51].mxu0  ;;  %2339 = vmatpush1.bf16.msra.mxu0 %v2338_v38  ;;  %v1353_v6 = vmax.f32 %v1318_v55, 0.0 }
 0x462   :  { %v1322_v59 = vadd.f32 %v1321_v57, %v1074_v49  ;;  %v1211_v60 = vadd.f32 %v1210_v58, %v1074_v49  ;;  %v1323_v61 = vpop.f32.mrb[51].mxu1  ;;  %2355 = vmatpush1.bf16.msra.mxu1 %v2354_v44 }
 0x463   :  { %v1354_v63 = vmax.f32 %v1209_v56, 0.0  ;;  %v1324_v0 = vadd.f32 %v1323_v61, %v1074_v49 }
 0x464   :  { %v1356_v4 = vmax.f32 %v1322_v59, 0.0  ;;  %v1355_v5 = vmax.f32 %v1211_v60, 0.0 }
 0x465   :  { %v2342_v7 = vpack.c.bf16 %v1354_v63, %v1350_v62  ;;  %v1357_v8 = vmax.f32 %v1324_v0, 0.0  ;;  %v1388_v62 = vpop.permute.xlu0 %1387 }
 0x466   :  { %v2358_v51 = vpack.c.bf16 %v1356_v4, %v1352_v1  ;;  %v2340_v9 = vpack.c.bf16 %v1355_v5, %v1351_v2  ;;  %v1393_v5 = vpop.permute.xlu1 %1392 }
 0x467   :  { %v2356_v52 = vpack.c.bf16 %v1357_v8, %v1353_v6 }
 0x468   :  { %2341 = vmatprep.subr.bf16.mxu0 %v2340_v9 }
 0x469   :  { %2357 = vmatprep.subr.bf16.mxu1 %v2356_v52  ;;  %2343 = vmatpush1.bf16.msra.mxu0 %v2342_v7 }
 0x46a   :  { %2359 = vmatpush1.bf16.msra.mxu1 %v2358_v51 }
 0x46c   :  { %2237 = vmatmul.mubr.msk.f32.vlgmr.msra.gmra.mrb[52].mxu0 %vm494_vm1, %v1358_v11 }
 0x46d   :  { %2245 = vmatmul.mubr.msk.f32.vlgmr.msra.gmra.mrb[52].mxu1 %vm494_vm1, %v1358_v11  ;;  %1509 = vmatprep.mubr.f32.mxu0 %v2454_v3 }
 0x46e   :  { %1622 = vmatprep.mubr.f32.mxu1 %v2454_v3 }
 0x470   :  { %2238 = vmatmul.mubr.msk.f32.gmra.mrb[54].mxu0 %vm494_vm1, %v1359_v36 }
 0x471   :  { %2246 = vmatmul.mubr.msk.f32.gmra.mrb[54].mxu1 %vm494_vm1, %v1359_v36  ;;  %1515 = vmatprep.mubr.f32.mxu0 %v2454_v3 }
 0x472   :  { %1628 = vmatprep.mubr.f32.mxu1 %v2454_v3 }
 0x474   :  { %2239 = vmatmul.mubr.msk.f32.gmra.mrb[56].mxu0 %vm494_vm1, %v1360_v43 }
 0x475   :  { %2247 = vmatmul.mubr.msk.f32.gmra.mrb[56].mxu1 %vm494_vm1, %v1360_v43  ;;  %1521 = vmatprep.mubr.f32.mxu0 %v2454_v3 }
 0x476   :  { %1634 = vmatprep.mubr.f32.mxu1 %v2454_v3 }
 0x478   :  { %2240 = vmatmul.mubr.msk.f32.gmra.mrb[58].mxu0 %vm494_vm1, %v1361_v15 }
 0x479   :  { %2248 = vmatmul.mubr.msk.f32.gmra.mrb[58].mxu1 %vm494_vm1, %v1361_v15  ;;  %1527 = vmatprep.mubr.f32.mxu0 %v2454_v3 }
 0x47a   :  { %1640 = vmatprep.mubr.f32.mxu1 %v2454_v3 }
 0x47c   :  { %2241 = vmatmul.mubr.msk.f32.gmra.mrb[60].mxu0 %vm494_vm1, %v1362_v16 }
 0x47d   :  { %2249 = vmatmul.mubr.msk.f32.gmra.mrb[60].mxu1 %vm494_vm1, %v1362_v16  ;;  %1533 = vmatprep.mubr.f32.mxu0 %v2454_v3 }
 0x47e   :  { %1646 = vmatprep.mubr.f32.mxu1 %v2454_v3 }
 0x480   :  { %2242 = vmatmul.mubr.msk.f32.gmra.mrb[62].mxu0 %vm494_vm1, %v1363_v17 }
 0x481   :  { %2250 = vmatmul.mubr.msk.f32.gmra.mrb[62].mxu1 %vm494_vm1, %v1363_v17  ;;  %1539 = vmatprep.mubr.f32.mxu0 %v2454_v3 }
 0x482   :  { %1652 = vmatprep.mubr.f32.mxu1 %v2454_v3 }
 0x484   :  { %2243 = vmatmul.mubr.msk.f32.gmra.mrb[64].mxu0 %vm494_vm1, %v1364_v18 }
 0x485   :  { %2251 = vmatmul.mubr.msk.f32.gmra.mrb[64].mxu1 %vm494_vm1, %v1364_v18  ;;  %1545 = vmatprep.mubr.f32.mxu0 %v2454_v3 }
 0x486   :  { %1658 = vmatprep.mubr.f32.mxu1 %v2454_v3 }
 0x488   :  { %2244 = vmatmul.mubr.msk.f32.gmra.mrb[66].mxu0 %vm494_vm1, %v1365_v19 }
 0x489   :  { %2252 = vmatmul.mubr.msk.f32.gmra.mrb[66].mxu1 %vm494_vm1, %v1365_v19  ;;  %1781 = vmatprep.mubr.f32.mxu0 %v2454_v3 }
 0x48a   :  { %1858 = vmatprep.mubr.f32.mxu1 %v2454_v3 }
 0x53f   :  { %v1505_v20 = vpop.f32.mrb[52].mxu0 }
 0x540   :  { %v1618_v21 = vpop.f32.mrb[52].mxu1  ;;  %v1507_v22 = vpop.f32.mrb[53].mxu0  ;;  %v1506_v33 = vadd.f32 %v1505_v20, %v1378_v27 }
 0x541   :  { %v1620_v32 = vpop.f32.mrb[53].mxu1  ;;  %v1619_v35 = vadd.f32 %v1618_v21, %v1378_v27  ;;  %v1508_v37 = vadd.f32 %v1507_v22, %v1378_v27 }
 0x542   :  { %v1621_v39 = vadd.f32 %v1620_v32, %v1378_v27  ;;  %v1665_v31 = vmax.f32 %v1506_v33, 0.0 }
 0x543   :  { %v1511_v38 = vpop.f32.mrb[54].mxu0  ;;  %v1667_v50 = vmax.f32 %v1619_v35, 0.0  ;;  %v1666_v53 = vmax.f32 %v1508_v37, 0.0 }
 0x544   :  { %v1512_v40 = vadd.f32 %v1511_v38, %v1383_v34  ;;  %v1624_v41 = vpop.f32.mrb[54].mxu1  ;;  %v1513_v42 = vpop.f32.mrb[55].mxu0  ;;  %v1668_v57 = vmax.f32 %v1621_v39, 0.0 }
 0x545   :  { %v1625_v44 = vadd.f32 %v1624_v41, %v1383_v34  ;;  %v1514_v25 = vadd.f32 %v1513_v42, %v1383_v34  ;;  %v1626_v23 = vpop.f32.mrb[55].mxu1  ;;  %v1398_v38 = vpop.permute.xlu0 %1397 }
 0x546   :  { %v1669_v29 = vmax.f32 %v1512_v40, 0.0  ;;  %v1627_v49 = vadd.f32 %v1626_v23, %v1383_v34 }
 0x547   :  { %v1671_v54 = vmax.f32 %v1625_v44, 0.0  ;;  %v1670_v55 = vmax.f32 %v1514_v25, 0.0  ;;  %v1517_v56 = vpop.f32.mrb[56].mxu0  ;;  %v1403_v25 = vpop.permute.xlu1 %1402 }
 0x548   :  { %v2362_v58 = vpack.c.bf16 %v1669_v29, %v1665_v31  ;;  %v1672_v59 = vmax.f32 %v1627_v49, 0.0  ;;  %v1630_v60 = vpop.f32.mrb[56].mxu1  ;;  %v1519_v61 = vpop.f32.mrb[57].mxu0  ;;  %v1518_v4 = vadd.f32 %v1517_v56, %v1388_v62 }
 0x549   :  { %v2378_v63 = vpack.c.bf16 %v1671_v54, %v1667_v50  ;;  %v2360_v0 = vpack.c.bf16 %v1670_v55, %v1666_v53  ;;  %v1632_v1 = vpop.f32.mrb[57].mxu1  ;;  %v1631_v6 = vadd.f32 %v1630_v60, %v1388_v62  ;;  %v1520_v7 = vadd.f32 %v1519_v61, %v1388_v62 }
 0x54a   :  { %v2376_v2 = vpack.c.bf16 %v1672_v59, %v1668_v57  ;;  %v1633_v51 = vadd.f32 %v1632_v1, %v1388_v62  ;;  %v1673_v16 = vmax.f32 %v1518_v4, 0.0 }
 0x54b   :  { %v1523_v8 = vpop.f32.mrb[58].mxu0  ;;  %2361 = vmatprep.subr.bf16.mxu0 %v2360_v0  ;;  %v1675_v19 = vmax.f32 %v1631_v6, 0.0  ;;  %v1674_v20 = vmax.f32 %v1520_v7, 0.0 }
 0x54c   :  { %v1524_v9 = vadd.f32 %v1523_v8, %v1393_v5  ;;  %v1636_v52 = vpop.f32.mrb[58].mxu1  ;;  %2377 = vmatprep.subr.bf16.mxu1 %v2376_v2  ;;  %v1525_v11 = vpop.f32.mrb[59].mxu0  ;;  %2363 = vmatpush1.bf16.msra.mxu0 %v2362_v58  ;;  %v1676_v32 = vmax.f32 %v1633_v51, 0.0 }
 0x54d   :  { %v1637_v36 = vadd.f32 %v1636_v52, %v1393_v5  ;;  %v1526_v43 = vadd.f32 %v1525_v11, %v1393_v5  ;;  %v1638_v15 = vpop.f32.mrb[59].mxu1  ;;  %2379 = vmatpush1.bf16.msra.mxu1 %v2378_v63  ;;  %v1408_v8 = vpop.permute.xlu0 %1407 }
 0x54e   :  { %v1677_v17 = vmax.f32 %v1524_v9, 0.0  ;;  %v1639_v18 = vadd.f32 %v1638_v15, %v1393_v5 }
 0x54f   :  { %v1679_v21 = vmax.f32 %v1637_v36, 0.0  ;;  %v1678_v22 = vmax.f32 %v1526_v43, 0.0  ;;  %v1529_v27 = vpop.f32.mrb[60].mxu0  ;;  %v1413_v43 = vpop.permute.xlu1 %1412 }
 0x550   :  { %v2366_v33 = vpack.c.bf16 %v1677_v17, %v1673_v16  ;;  %v1680_v34 = vmax.f32 %v1639_v18, 0.0  ;;  %v1642_v35 = vpop.f32.mrb[60].mxu1  ;;  %v1531_v37 = vpop.f32.mrb[61].mxu0  ;;  %v1530_v44 = vadd.f32 %v1529_v27, %v1398_v38 }
 0x551   :  { %v2382_v39 = vpack.c.bf16 %v1679_v21, %v1675_v19  ;;  %v2364_v40 = vpack.c.bf16 %v1678_v22, %v1674_v20  ;;  %v1644_v41 = vpop.f32.mrb[61].mxu1  ;;  %v1643_v23 = vadd.f32 %v1642_v35, %v1398_v38  ;;  %v1532_v31 = vadd.f32 %v1531_v37, %v1398_v38 }
 0x552   :  { %v2380_v42 = vpack.c.bf16 %v1680_v34, %v1676_v32  ;;  %v1645_v49 = vadd.f32 %v1644_v41, %v1398_v38  ;;  %v1681_v58 = vmax.f32 %v1530_v44, 0.0 }
 0x553   :  { %v1535_v29 = vpop.f32.mrb[62].mxu0  ;;  %2365 = vmatprep.subr.bf16.mxu0 %v2364_v40  ;;  %v1683_v61 = vmax.f32 %v1643_v23, 0.0  ;;  %v1682_v62 = vmax.f32 %v1532_v31, 0.0 }
 0x554   :  { %v1536_v50 = vadd.f32 %v1535_v29, %v1403_v25  ;;  %v1648_v53 = vpop.f32.mrb[62].mxu1  ;;  %2381 = vmatprep.subr.bf16.mxu1 %v2380_v42  ;;  %v1537_v54 = vpop.f32.mrb[63].mxu0  ;;  %2367 = vmatpush1.bf16.msra.mxu0 %v2366_v33  ;;  %v1684_v2 = vmax.f32 %v1645_v49, 0.0  ;;  %v1697_v29 = vld [vmem:[%s3042_s3] sm:$0xff]  ;;  %v1698_v49 = vld [vmem:[%s3042_s3 + $0x8] sm:$0xff] }
 0x555   :  { %v1649_v55 = vadd.f32 %v1648_v53, %v1403_v25  ;;  %v1538_v56 = vadd.f32 %v1537_v54, %v1403_v25  ;;  %v1650_v57 = vpop.f32.mrb[63].mxu1  ;;  %2383 = vmatpush1.bf16.msra.mxu1 %v2382_v39  ;;  %v1878_v53 = vpop.permute.xlu1 %1877 }
 0x556   :  { %v1685_v59 = vmax.f32 %v1536_v50, 0.0  ;;  %v1651_v60 = vadd.f32 %v1650_v57, %v1403_v25  ;;  %v1704_v50 = vpop.permute.xlu0 %1703 }
 0x557   :  { %v1687_v63 = vmax.f32 %v1649_v55, 0.0  ;;  %v1686_v0 = vmax.f32 %v1538_v56, 0.0  ;;  %v1541_v1 = vpop.f32.mrb[64].mxu0 }
 0x558   :  { %v2370_v4 = vpack.c.bf16 %v1685_v59, %v1681_v58  ;;  %v1688_v5 = vmax.f32 %v1651_v60, 0.0  ;;  %v1654_v6 = vpop.f32.mrb[64].mxu1  ;;  %v1543_v7 = vpop.f32.mrb[65].mxu0  ;;  %v1542_v36 = vadd.f32 %v1541_v1, %v1408_v8 }
 0x559   :  { %v2386_v51 = vpack.c.bf16 %v1687_v63, %v1683_v61  ;;  %v2368_v9 = vpack.c.bf16 %v1686_v0, %v1682_v62  ;;  %v1656_v52 = vpop.f32.mrb[65].mxu1  ;;  %v1655_v15 = vadd.f32 %v1654_v6, %v1408_v8  ;;  %v1544_v16 = vadd.f32 %v1543_v7, %v1408_v8  ;;  %v1907_v7 = vpop.permute.xlu1 %1906 }
 0x55a   :  { %v2384_v11 = vpack.c.bf16 %v1688_v5, %v1684_v2  ;;  %v1657_v18 = vadd.f32 %v1656_v52, %v1408_v8  ;;  %v1689_v33 = vmax.f32 %v1542_v36, 0.0 }
 0x55b   :  { %v1547_v17 = vpop.f32.mrb[66].mxu0  ;;  %2369 = vmatprep.subr.bf16.mxu0 %v2368_v9  ;;  %v1691_v37 = vmax.f32 %v1655_v15, 0.0  ;;  %v1690_v38 = vmax.f32 %v1544_v16, 0.0 }
 0x55c   :  { %v1548_v19 = vadd.f32 %v1547_v17, %v1413_v43  ;;  %v1660_v20 = vpop.f32.mrb[66].mxu1  ;;  %2385 = vmatprep.subr.bf16.mxu1 %v2384_v11  ;;  %v1549_v21 = vpop.f32.mrb[67].mxu0  ;;  %2371 = vmatpush1.bf16.msra.mxu0 %v2370_v4  ;;  %v1692_v41 = vmax.f32 %v1657_v18, 0.0 }
 0x55d   :  { %v1661_v22 = vadd.f32 %v1660_v20, %v1413_v43  ;;  %v1550_v27 = vadd.f32 %v1549_v21, %v1413_v43  ;;  %v1662_v32 = vpop.f32.mrb[67].mxu1  ;;  %2387 = vmatpush1.bf16.msra.mxu1 %v2386_v51 }
 0x55e   :  { %v1693_v34 = vmax.f32 %v1548_v19, 0.0  ;;  %v1663_v35 = vadd.f32 %v1662_v32, %v1413_v43 }
 0x55f   :  { %v1695_v39 = vmax.f32 %v1661_v22, 0.0  ;;  %v1694_v40 = vmax.f32 %v1550_v27, 0.0 }
 0x560   :  { %v2374_v42 = vpack.c.bf16 %v1693_v34, %v1689_v33  ;;  %v1696_v44 = vmax.f32 %v1663_v35, 0.0  ;;  %v1709_v35 = vpop.permute.xlu0 %1708 }
 0x561   :  { %v2390_v25 = vpack.c.bf16 %v1695_v39, %v1691_v37  ;;  %v2372_v23 = vpack.c.bf16 %v1694_v40, %v1690_v38 }
 0x562   :  { %v2388_v31 = vpack.c.bf16 %v1696_v44, %v1692_v41 }
 0x563   :  { %2373 = vmatprep.subr.bf16.mxu0 %v2372_v23 }
 0x564   :  { %2389 = vmatprep.subr.bf16.mxu1 %v2388_v31  ;;  %2375 = vmatpush1.bf16.msra.mxu0 %v2374_v42 }
 0x565   :  { %2391 = vmatpush1.bf16.msra.mxu1 %v2390_v25 }
 0x567   :  { %2253 = vmatmul.mubr.msk.f32.vlgmr.msra.gmra.mrb[68].mxu0 %vm494_vm1, %v1697_v29 }
 0x568   :  { %2255 = vmatmul.mubr.msk.f32.vlgmr.msra.gmra.mrb[68].mxu1 %vm494_vm1, %v1697_v29  ;;  %1787 = vmatprep.mubr.f32.mxu0 %v2454_v3 }
 0x569   :  { %1864 = vmatprep.mubr.f32.mxu1 %v2454_v3 }
 0x56b   :  { %2254 = vmatmul.mubr.msk.f32.gmra.mrb[70].mxu0 %vm494_vm1, %v1698_v49 }
 0x56c   :  { %2256 = vmatmul.mubr.msk.f32.gmra.mrb[70].mxu1 %vm494_vm1, %v1698_v49  ;;  %2027 = vmatprep.mubr.f32.mxu0 %v2454_v3 }
 0x56d   :  { %2098 = vmatprep.mubr.f32.mxu1 %v2454_v3 }
 0x63a   :  { %v1783_v54 = vpop.f32.mrb[68].mxu0 }
 0x63b   :  { %v1784_v55 = vadd.f32 %v1783_v54, %v1704_v50  ;;  %v1860_v56 = vpop.f32.mrb[68].mxu1  ;;  %v1785_v57 = vpop.f32.mrb[69].mxu0 }
 0x63c   :  { %v1861_v58 = vadd.f32 %v1860_v56, %v1704_v50  ;;  %v1786_v59 = vadd.f32 %v1785_v57, %v1704_v50  ;;  %v1862_v60 = vpop.f32.mrb[69].mxu1 }
 0x63d   :  { %v1871_v61 = vmax.f32 %v1784_v55, 0.0  ;;  %v1863_v62 = vadd.f32 %v1862_v60, %v1704_v50 }
 0x63e   :  { %v1873_v63 = vmax.f32 %v1861_v58, 0.0  ;;  %v1872_v0 = vmax.f32 %v1786_v59, 0.0  ;;  %v1789_v1 = vpop.f32.mrb[70].mxu0 }
 0x63f   :  { %v1880_v2 = vmul.f32 %v1878_v53, %v1871_v61  ;;  %v1874_v4 = vmax.f32 %v1863_v62, 0.0  ;;  %v1866_v5 = vpop.f32.mrb[70].mxu1  ;;  %v1791_v6 = vpop.f32.mrb[71].mxu0  ;;  %v1790_v37 = vadd.f32 %v1789_v1, %v1709_v35 }
 0x640   :  { %v1882_v3 = vmul.f32 %v1878_v53, %v1873_v63  ;;  %v1881_v8 = vmul.f32 %v1878_v53, %v1872_v0  ;;  %v1868_v51 = vpop.f32.mrb[71].mxu1  ;;  %v1867_v38 = vadd.f32 %v1866_v5, %v1709_v35  ;;  %v1792_v39 = vadd.f32 %v1791_v6, %v1709_v35 }
 0x641   :  { %v1888_v9 = vsub.f32 0.0, %v1880_v2  ;;  %v1917_v52 = vmul.f32 %v1907_v7, %v1880_v2  ;;  %v1883_v11 = vmul.f32 %v1878_v53, %v1874_v4  ;;  %v1884_v40 = vsub.f32 %v2857_v45, %v1790_v37 }
 0x642   :  { %v1890_v36 = vsub.f32 0.0, %v1882_v3  ;;  %v1919_v43 = vmul.f32 %v1907_v7, %v1882_v3  ;;  %v1889_v15 = vsub.f32 0.0, %v1881_v8  ;;  %v1918_v16 = vmul.f32 %v1907_v7, %v1881_v8 }
 0x643   :  { %v1892_v17 = vmul.f32 1.442695, %v1888_v9  ;;  %v1921_v18 = vsub.f32 %v2844_v10, %v1917_v52  ;;  %v1891_v19 = vsub.f32 0.0, %v1883_v11  ;;  %v1920_v20 = vmul.f32 %v1907_v7, %v1883_v11 }
 0x644   :  { %v1896_v21 = vmul.f32 1.442695, %v1890_v36  ;;  %v1923_v22 = vsub.f32 %v2846_v12, %v1919_v43  ;;  %v1894_v27 = vmul.f32 1.442695, %v1889_v15  ;;  %v1922_v32 = vsub.f32 %v2848_v13, %v1918_v16  ;;  %v1958_v16 = vpop.permute.xlu0 %1957 }
 0x645   :  { %2421 = vpow2.f32 %v1892_v17  ;;  %v1898_v33 = vmul.f32 1.442695, %v1891_v19  ;;  %v1924_v34 = vsub.f32 %v2850_v14, %v1920_v20  ;;  %v1869_v10 = vadd.f32 %v1868_v51, %v1709_v35 }
 0x646   :  { %2423 = vpow2.f32 %v1896_v21  ;;  %v1886_v12 = vsub.f32 %v2860_v26, %v1867_v38  ;;  %v1885_v13 = vsub.f32 %v2863_v46, %v1792_v39  ;;  %v1953_v46 = vld [vmem:[%s3046_s7] sm:$0xff]  ;;  %v1925_v57 = vrot.slane %v1921_v18, 4  ;;  %s2455_s7 = smov [#allocation2]  }
 0x647   :  { %2425 = vpow2.f32 %v1894_v27  ;;  %v1887_v14 = vsub.f32 %v2866_v47, %v1869_v10  ;;  %v1931_v58 = vrot.slane %v1922_v32, 4  ;;  %s2130_s27 = sshll.u32 %s2455_s7, 4  ;;  %s2131_s27 = int_to_ptr.vmem [resolvable:$true] %s2130_s27 }
 0x648   :  { %2427 = vpow2.f32 %v1898_v33  ;;  %v1926_v59 = vadd.f32 %v1925_v57, %v1921_v18  ;;  %v2110_v18 = vpop.permute.xlu1 %2109  ;;  %s2429_s28 = scalar_lea.vmem %s2131_s27, 512  ;;  %p2434_p1 = scmp.lt.s32.totalorder %s2131_s27, %s2131_s27 }
 0x649   :  { %v1932_v60 = vadd.f32 %v1931_v58, %v1922_v32  ;;  %p2430_p0 = scmp.ne.s32.totalorder %s2131_s27, %s2429_s28  ;;  %p2435_p2 = scmp.lt.s32.totalorder %s2429_s28, %s2429_s28 }
 0x64a   :  { %v1927_v62 = vrot.slane %v1926_v59, 2 }
 0x64b   :  { %v1933_v0 = vrot.slane %v1932_v60, 2  ;;  %p2436_p3 = por %p2435_p2, %p2434_p1 }
 0x64d   :  { %v1934_v4 = vadd.f32 %v1933_v0, %v1932_v60  ;;  %p2437_p4 = pnand %p2436_p3, %p2430_p0 }
 0x64f   :  { %v2422_v41 = vpop.eup %2421  ;;  %v1935_v3 = vrot.slane %v1934_v4, 1 }
 0x650   :  { %v2424_v42 = vpop.eup %2423  ;;  %v1900_v44 = vmul.f32 %v2422_v41, %v1884_v40 }
 0x651   :  { %v2426_v25 = vpop.eup %2425  ;;  %v1902_v23 = vmul.f32 %v2424_v42, %v1886_v12  ;;  %v1936_v52 = vadd.f32 %v1935_v3, %v1934_v4 }
 0x652   :  { %v2428_v31 = vpop.eup %2427  ;;  %v1901_v29 = vmul.f32 %v2426_v25, %v1885_v13  ;;  %v1909_v49 = vmul.f32 %v1907_v7, %v1900_v44 }
 0x653   :  { %v1903_v50 = vmul.f32 %v2428_v31, %v1887_v14  ;;  %v1911_v53 = vmul.f32 %v1907_v7, %v1902_v23  ;;  %v2258_v15 = vadd.f32 -5.5451775, %v1936_v52 }
 0x654   :  { %v1910_v54 = vmul.f32 %v1907_v7, %v1901_v29  ;;  %v1913_v26 = vadd.f32 %v1909_v49, %v2875_v30 }
 0x655   :  { %v1912_v55 = vmul.f32 %v1907_v7, %v1903_v50  ;;  %v1915_v47 = vadd.f32 %v1911_v53, %v2882_v28  ;;  %v1928_v28 = vadd.f32 %v1927_v62, %v1926_v59  ;;  %v2113_v35 = vmul.f32 %v2258_v15, %v2110_v18 }
 0x656   :  { %v1914_v45 = vadd.f32 %v1910_v54, %v2869_v24  ;;  %v1937_v24 = vrot.slane %v1923_v22, 4 }
 0x657   :  { %v1916_v56 = vadd.f32 %v1912_v55, %v2872_v48  ;;  %v1943_v48 = vrot.slane %v1924_v34, 4  ;;  %v1929_v6 = vrot.slane %v1928_v28, 1 }
 0x658   :  { %1963 = vmatprep.subr.mxu0 %v1914_v45  ;;  %v1938_v30 = vadd.f32 %v1937_v24, %v1923_v22 }
 0x659   :  { %2034 = vmatprep.subr.mxu1 %v1916_v56  ;;  %1964 = vmatpush1.msra.mxu0 %v1913_v26  ;;  %v1944_v61 = vadd.f32 %v1943_v48, %v1924_v34  ;;  %v1930_v51 = vadd.f32 %v1929_v6, %v1928_v28 }
 0x65a   :  { %2035 = vmatpush1.msra.mxu1 %v1915_v47  ;;  %2261 = vmatmul.mubr.msk.f32.vlgmr.msra.gmra.mrb[72].mxu0 %vm153_vm0, %v1953_v46  ;;  %v1939_v63 = vrot.slane %v1938_v30, 2 }
 0x65b   :  { %2262 = vmatmul.mubr.msk.f32.vlgmr.msra.gmra.mrb[72].mxu1 %vm153_vm0, %v1953_v46  ;;  %v1945_v1 = vrot.slane %v1944_v61, 2  ;;  %v2257_v36 = vadd.f32 -5.5451775, %v1930_v51 }
 0x65c   :  { %v1940_v2 = vadd.f32 %v1939_v63, %v1938_v30 }
 0x65d   :  { %v1946_v5 = vadd.f32 %v1945_v1, %v1944_v61  ;;  %v2112_v21 = vmul.f32 %v2257_v36, %v2110_v18 }
 0x65e   :  { %v1941_v7 = vrot.slane %v1940_v2, 1 }
 0x65f   :  { %v1947_v8 = vrot.slane %v1946_v5, 1 }
 0x660   :  { %v1942_v9 = vadd.f32 %v1941_v7, %v1940_v2 }
 0x661   :  { %v1948_v11 = vadd.f32 %v1947_v8, %v1946_v5 }
 0x662   :  { %v2259_v43 = vadd.f32 -5.5451775, %v1942_v9 }
 0x663   :  { %v2260_v17 = vadd.f32 -5.5451775, %v1948_v11 }
 0x664   :  { %v2114_v33 = vmul.f32 %v2259_v43, %v2110_v18 }
 0x665   :  { %v2115_v10 = vmul.f32 %v2260_v17, %v2110_v18 }
 0x72d   :  { %v2029_v19 = vpop.f32.mrb[72].mxu0 }
 0x72e   :  { %v2030_v20 = vadd.f32 %v2029_v19, %v1958_v16  ;;  %v2100_v22 = vpop.f32.mrb[72].mxu1  ;;  %v2031_v27 = vpop.f32.mrb[73].mxu0 }
 0x72f   :  { %v2101_v32 = vadd.f32 %v2100_v22, %v1958_v16  ;;  %v2032_v34 = vadd.f32 %v2031_v27, %v1958_v16  ;;  %v2102_v37 = vpop.f32.mrb[73].mxu1 }
 0x730   :  { %v2116_v38 = vadd.f32 %v2112_v21, %v2030_v20  ;;  %v2103_v39 = vadd.f32 %v2102_v37, %v1958_v16 }
 0x731   :  { %v2118_v40 = vadd.f32 %v2114_v33, %v2101_v32  ;;  %v2117_v41 = vadd.f32 %v2113_v35, %v2032_v34 }
 0x732   :  { %2120 = vst [vmem:[#allocation2] sm:$0xff] %v2116_v38  ;;  %v2119_v12 = vadd.f32 %v2115_v10, %v2103_v39 }
 0x733   :  { %2122 = vst [vmem:[#allocation2 + $0x10] sm:$0xff] %v2118_v40  ;;  %2121 = vst [vmem:[#allocation2 + $0x8] sm:$0xff] %v2117_v41 }
 0x734   :  { %2123 = vst [vmem:[#allocation2 + $0x18] sm:$0xff] %v2119_v12 }
 0x735   :  { %2440 = shalt.err (!%p2437_p4)
}
 0x736   :  { %s2441_s10 = scalar_lea.hbm %s3048_s9, 512 }
 0x737   :  { %p2442_p5 = scmp.ne.s32.totalorder %s3048_s9, %s2441_s10  ;;  %p2445_p6 = scmp.lt.u32.totalorder %s2441_s10, %s3048_s9 }
 0x739   :  { %p2447_p7 = pnand %p2445_p6, %p2442_p5 }
 0x73b   :  { %2450 = shalt.err (!%p2447_p7)
}
 0x73c   :  { %2133 = dma.vmem_to_hbm [thread:$0]  %s2131_s27, 512, %s3048_s9, [#allocation3]  }
 0x73d   :  { %2451 = dma.done.wait [#allocation3], 512  }
 0x73e   :  { %2452 = vsyncadd [#allocation3], 4294966784 }
 0x73f   :  { %2137 = vsyncpa [#allocation3], 1 }

</bundles_post_ra>
